<compile_context>
chip_gen: v5e
topology: v5e:2x2
jax: 0.10.0
libtpu: 0.0.40
codegen_flags: <defaults>
</compile_context>

<pallas_src>
import functools

import jax
import jax.numpy as jnp
from jax.experimental import pallas as pl
from jax.experimental.pallas import tpu as pltpu

REGION_NUM = 64
RIGHT_EPS = 1e-6      # right end of the last region (PyTorch: max + 1e-6)


def _rq_kernel(x_ref, side_ref, o_ref, *, region_num, chunk):
    """Randomized quantization for a (TC, HW) block of channels.

    x_ref:    (TC, HW)    input values (input dtype)
    side_ref: (TC, 4*R)   packed f32 per-channel tables:
                          [ left_pct | rr_pct | rr_eps | pad ] (R lanes each)
    o_ref:    (TC, HW)    quantized output (input dtype)
    """
    R = region_num
    tc, hw = x_ref.shape

    # ---- per-channel min / max (one streaming pass over the block) --------
    xm = x_ref[...]
    min_v = jnp.min(xm, axis=1, keepdims=True).astype(jnp.float32)   # (TC, 1)
    max_v = jnp.max(xm, axis=1, keepdims=True).astype(jnp.float32)   # (TC, 1)
    rng = max_v - min_v

    # ---- boundary / collapse-value tables (hoisted out of the hot chain) --
    side = side_ref[...]
    # thr[:, r] = left end of region r (thr[:, 0] == min, unused by the chain)
    thr = min_v + side[:, 0:R] * rng                                  # (TC, R)
    # rr[:, r] = 'inside_random' collapse value of region r
    #            (rr_eps carries the absolute +1e-6 term of the last region)
    rr = min_v + side[:, R:2 * R] * rng + side[:, 2 * R:3 * R]        # (TC, R)

    # hoist the per-boundary column slices; the where-chain only re-uses them
    # as lane-broadcast sources (XLU slot, idle while the chain is VALU-bound)
    thr_cols = [thr[:, r:r + 1] for r in range(R)]                    # (TC, 1)
    rr_cols = [rr[:, r:r + 1] for r in range(R)]                      # (TC, 1)

    # ---- register-resident running-select chain over lane chunks ----------
    # For each chunk: load x once, run the 63 sorted-boundary compare+selects
    # on vreg-resident values, store proxy once.  After the chain, proxy holds
    # rr[r*] where r* = max{r : x >= thr[r]}, which is exactly the reference's
    # inclusive-left / exclusive-right region membership (the last region's
    # checking right end max+1 is always satisfied since x <= max).
    # Chunk starts/sizes are static Python ints -> aligned static slices.
    for col in range(0, hw, chunk):
        w = min(chunk, hw - col)
        xc = x_ref[:, col:col + w].astype(jnp.float32)
        proxy = jnp.broadcast_to(rr_cols[0], (tc, w))
        for r in range(1, R):
            proxy = jnp.where(xc >= thr_cols[r], rr_cols[r], proxy)
        o_ref[:, col:col + w] = proxy.astype(o_ref.dtype)


def _round_up(a, b):
    return (a + b - 1) // b * b


@functools.partial(jax.jit, static_argnames=("region_num",))
def randomized_quantization_aug(x, key, region_num=REGION_NUM):
    """x: (B, N, c) array (data['x']). Returns data['pose'] of shape (B, N, c)."""
    B, N, c = x.shape
    C = B * c
    R = region_num

    # (B, N, c) -> (B, c, N) -> (C, N): per-channel compute layout (relayout
    # glue; see TODO(synk) at top).  No padding copy of x is written to HBM:
    # partial channel blocks are handled by Pallas block masking and per-row
    # min/max never crosses rows.
    x2 = jnp.transpose(x, (0, 2, 1)).reshape(C, N)

    # ---- randomness (mirrors the module's sampling) ------------------------
    k1, k2 = jax.random.split(key)
    # spacing == 'random': uniform region percentiles, sorted per channel.
    bnd = jnp.sort(jax.random.uniform(k1, (C, R - 1), dtype=jnp.float32), axis=1)
    # collapse_to_val == 'inside_random': one uniform sample per region/channel.
    pp = jax.random.uniform(k2, (C, R), dtype=jnp.float32)

    # percentile-space tables; everything not depending on min/max is hoisted
    # here so the kernel only does two fused (TC, R) passes to build thr / rr.
    zeros1 = jnp.zeros((C, 1), jnp.float32)
    ones1 = jnp.ones((C, 1), jnp.float32)
    left_pct = jnp.concatenate([zeros1, bnd], axis=1)            # (C, R) left ends
    right_pct = jnp.concatenate([bnd, ones1], axis=1)            # (C, R) right ends
    rr_pct = left_pct + pp * (right_pct - left_pct)              # collapse percentile
    rr_eps = jnp.zeros((C, R), jnp.float32).at[:, R - 1].set(pp[:, R - 1] * RIGHT_EPS)
    # single lane-dense side operand: [left_pct | rr_pct | rr_eps | pad]
    side = jnp.concatenate(
        [left_pct, rr_pct, rr_eps, jnp.zeros((C, R), jnp.float32)], axis=1)  # (C, 4R)

    # ---- tiling -------------------------------------------------------------
    HW128 = _round_up(N, 128)
    CH = min(2048, HW128)                 # lane-chunk width of the vreg-resident chain
    REG_ELEMS = 16 * 1024                 # x-chunk + proxy-chunk ~= 128 KiB of vregs
    CODE_ELEMS = 128 * 1024               # cap block elems (chain is fully unrolled)
    C8 = _round_up(C, 8)
    TC = min(C8,
             max(8, (REG_ELEMS // CH) // 8 * 8),
             max(8, (CODE_ELEMS // HW128) // 8 * 8))
    if pl.cdiv(C, TC) == 1 and C8 >= 16:
        # keep >= 2 grid steps so the "parallel" axis can shard across the
        # 2 TensorCores on v7x (no-op on v5e/v6e).
        TC = _round_up((C8 + 1) // 2, 8)
    grid = (pl.cdiv(C, TC),)

    kernel = functools.partial(_rq_kernel, region_num=R, chunk=CH)
    out = pl.pallas_call(
        kernel,
        out_shape=jax.ShapeDtypeStruct((C, N), x.dtype),
        grid_spec=pltpu.PrefetchScalarGridSpec(
            num_scalar_prefetch=0,
            grid=grid,
            in_specs=[
                pl.BlockSpec((TC, N), lambda i: (i, 0)),
                pl.BlockSpec((TC, 4 * R), lambda i: (i, 0)),
            ],
            out_specs=pl.BlockSpec((TC, N), lambda i: (i, 0)),
        ),
        compiler_params=pltpu.CompilerParams(
            dimension_semantics=("parallel",),
            # blocks are <= ~0.5 MiB, so double-buffered in+out stays far
            # under this on all of v5e / v6e / v7x (64 MiB physical).
            vmem_limit_bytes=32 * 1024 * 1024,
        ),
    )(x2, side)

    # (C, N) -> (B, c, N) -> (B, N, c) == data['pose']
    pose = jnp.transpose(out.reshape(B, c, N), (0, 2, 1))
    return pose


if __name__ == "__main__":
    key = jax.random.PRNGKey(0)
    kx, kaug = jax.random.split(key)

    # data['x']: (B, N, c) point-cloud-style input (small demo shapes)
    B, N, c = 2, 16, 4
    x = jax.random.normal(kx, (B, N, c), dtype=jnp.float32)

    pose = jax.block_until_ready(randomized_quantization_aug(x, kaug))
    assert pose.shape == (B, N, c) and pose.dtype == x.dtype

    # pure-JAX reference of the same forward (one-hot / argmax formulation of
    # the PyTorch module, identical RNG draws as the wrapper).
    C, R = B * c, REGION_NUM
    k1, k2 = jax.random.split(kaug)
    bnd = jnp.sort(jax.random.uniform(k1, (C, R - 1), dtype=jnp.float32), axis=1)
    pp = jax.random.uniform(k2, (C, R), dtype=jnp.float32)
    xc = jnp.transpose(x, (0, 2, 1)).reshape(C, N)
    min_v = xc.min(axis=1, keepdims=True)
    max_v = xc.max(axis=1, keepdims=True)
    pos = bnd * (max_v - min_v) + min_v                                  # (C, R-1)
    lefts = jnp.concatenate([min_v, pos], axis=1)                        # (C, R)
    rights = jnp.concatenate([pos, max_v + RIGHT_EPS], axis=1)           # (C, R)
    rnd = lefts + pp * (rights - lefts)                                  # (C, R)
    rid = jnp.sum((xc[:, :, None] >= lefts[:, None, :]).astype(jnp.int32),
                  axis=2) - 1                                            # (C, N)
    ref_pose = jnp.transpose(
        jnp.take_along_axis(rnd, rid, axis=1).reshape(B, c, N), (0, 2, 1))

    assert bool(jnp.allclose(pose, ref_pose, atol=1e-5, rtol=1e-5))

    # sanity: every quantized value lies in its channel's [min, max + 1e-6]
    pc = jnp.transpose(pose, (0, 2, 1)).reshape(C, N)
    assert bool(jnp.all((pc >= min_v - 1e-5) & (pc <= max_v + RIGHT_EPS + 1e-5)))

    print("KERNEL_OK")
</pallas_src>

<mosaic_0001>
module attributes {stable_mosaic.version = 11 : i64} {
  func.func @_rq_kernel(%arg0: i32, %arg1: memref<8x16xf32, #tpu.memory_space<vmem>>, %arg2: memref<8x256xf32, #tpu.memory_space<vmem>>, %arg3: memref<8x16xf32, #tpu.memory_space<vmem>>) attributes {dimension_semantics = [#tpu.dimension_semantics<parallel>], iteration_bounds = array<i64: 1>, scalar_prefetch = 0 : i64, scratch_operands = 0 : i64, tpu.core_type = #tpu.core_type<tc>, window_params = [{transform_indices = @transform_0, window_bounds = array<i64: 8, 16>}, {transform_indices = @transform_1, window_bounds = array<i64: 8, 256>}, {transform_indices = @transform_2, window_bounds = array<i64: 8, 16>}]} {
    %c0 = arith.constant 0 : index
    %c0_0 = arith.constant 0 : index
    %0 = vector.load %arg1[%c0, %c0_0] : memref<8x16xf32, #tpu.memory_space<vmem>>, vector<8x16xf32>
    %cst = arith.constant dense<0x7F800000> : vector<8xf32>
    %1 = vector.multi_reduction <minimumf>, %0, %cst [1] : vector<8x16xf32> to vector<8xf32>
    %2 = vector.shape_cast %1 : vector<8xf32> to vector<8x1xf32>
    %cst_1 = arith.constant dense<0xFF800000> : vector<8xf32>
    %3 = vector.multi_reduction <maximumf>, %0, %cst_1 [1] : vector<8x16xf32> to vector<8xf32>
    %4 = vector.shape_cast %3 : vector<8xf32> to vector<8x1xf32>
    %5 = arith.subf %4, %2 : vector<8x1xf32>
    %c0_2 = arith.constant 0 : index
    %c0_3 = arith.constant 0 : index
    %6 = vector.load %arg2[%c0_2, %c0_3] : memref<8x256xf32, #tpu.memory_space<vmem>>, vector<8x256xf32>
    %7 = vector.extract_strided_slice %6 {offsets = [0, 0], sizes = [8, 64], strides = [1, 1]} : vector<8x256xf32> to vector<8x64xf32>
    %8 = vector.broadcast %5 : vector<8x1xf32> to vector<8x64xf32>
    %9 = arith.mulf %7, %8 : vector<8x64xf32>
    %10 = vector.broadcast %2 : vector<8x1xf32> to vector<8x64xf32>
    %11 = arith.addf %10, %9 : vector<8x64xf32>
    %12 = vector.extract_strided_slice %6 {offsets = [0, 64], sizes = [8, 64], strides = [1, 1]} : vector<8x256xf32> to vector<8x64xf32>
    %13 = vector.broadcast %5 : vector<8x1xf32> to vector<8x64xf32>
    %14 = arith.mulf %12, %13 : vector<8x64xf32>
    %15 = vector.broadcast %2 : vector<8x1xf32> to vector<8x64xf32>
    %16 = arith.addf %15, %14 : vector<8x64xf32>
    %17 = vector.extract_strided_slice %6 {offsets = [0, 128], sizes = [8, 64], strides = [1, 1]} : vector<8x256xf32> to vector<8x64xf32>
    %18 = arith.addf %16, %17 : vector<8x64xf32>
    %19 = vector.extract_strided_slice %11 {offsets = [0, 1], sizes = [8, 1], strides = [1, 1]} : vector<8x64xf32> to vector<8x1xf32>
    %20 = vector.extract_strided_slice %11 {offsets = [0, 2], sizes = [8, 1], strides = [1, 1]} : vector<8x64xf32> to vector<8x1xf32>
    %21 = vector.extract_strided_slice %11 {offsets = [0, 3], sizes = [8, 1], strides = [1, 1]} : vector<8x64xf32> to vector<8x1xf32>
    %22 = vector.extract_strided_slice %11 {offsets = [0, 4], sizes = [8, 1], strides = [1, 1]} : vector<8x64xf32> to vector<8x1xf32>
    %23 = vector.extract_strided_slice %11 {offsets = [0, 5], sizes = [8, 1], strides = [1, 1]} : vector<8x64xf32> to vector<8x1xf32>
    %24 = vector.extract_strided_slice %11 {offsets = [0, 6], sizes = [8, 1], strides = [1, 1]} : vector<8x64xf32> to vector<8x1xf32>
    %25 = vector.extract_strided_slice %11 {offsets = [0, 7], sizes = [8, 1], strides = [1, 1]} : vector<8x64xf32> to vector<8x1xf32>
    %26 = vector.extract_strided_slice %11 {offsets = [0, 8], sizes = [8, 1], strides = [1, 1]} : vector<8x64xf32> to vector<8x1xf32>
    %27 = vector.extract_strided_slice %11 {offsets = [0, 9], sizes = [8, 1], strides = [1, 1]} : vector<8x64xf32> to vector<8x1xf32>
    %28 = vector.extract_strided_slice %11 {offsets = [0, 10], sizes = [8, 1], strides = [1, 1]} : vector<8x64xf32> to vector<8x1xf32>
    %29 = vector.extract_strided_slice %11 {offsets = [0, 11], sizes = [8, 1], strides = [1, 1]} : vector<8x64xf32> to vector<8x1xf32>
    %30 = vector.extract_strided_slice %11 {offsets = [0, 12], sizes = [8, 1], strides = [1, 1]} : vector<8x64xf32> to vector<8x1xf32>
    %31 = vector.extract_strided_slice %11 {offsets = [0, 13], sizes = [8, 1], strides = [1, 1]} : vector<8x64xf32> to vector<8x1xf32>
    %32 = vector.extract_strided_slice %11 {offsets = [0, 14], sizes = [8, 1], strides = [1, 1]} : vector<8x64xf32> to vector<8x1xf32>
    %33 = vector.extract_strided_slice %11 {offsets = [0, 15], sizes = [8, 1], strides = [1, 1]} : vector<8x64xf32> to vector<8x1xf32>
    %34 = vector.extract_strided_slice %11 {offsets = [0, 16], sizes = [8, 1], strides = [1, 1]} : vector<8x64xf32> to vector<8x1xf32>
    %35 = vector.extract_strided_slice %11 {offsets = [0, 17], sizes = [8, 1], strides = [1, 1]} : vector<8x64xf32> to vector<8x1xf32>
    %36 = vector.extract_strided_slice %11 {offsets = [0, 18], sizes = [8, 1], strides = [1, 1]} : vector<8x64xf32> to vector<8x1xf32>
    %37 = vector.extract_strided_slice %11 {offsets = [0, 19], sizes = [8, 1], strides = [1, 1]} : vector<8x64xf32> to vector<8x1xf32>
    %38 = vector.extract_strided_slice %11 {offsets = [0, 20], sizes = [8, 1], strides = [1, 1]} : vector<8x64xf32> to vector<8x1xf32>
    %39 = vector.extract_strided_slice %11 {offsets = [0, 21], sizes = [8, 1], strides = [1, 1]} : vector<8x64xf32> to vector<8x1xf32>
    %40 = vector.extract_strided_slice %11 {offsets = [0, 22], sizes = [8, 1], strides = [1, 1]} : vector<8x64xf32> to vector<8x1xf32>
    %41 = vector.extract_strided_slice %11 {offsets = [0, 23], sizes = [8, 1], strides = [1, 1]} : vector<8x64xf32> to vector<8x1xf32>
    %42 = vector.extract_strided_slice %11 {offsets = [0, 24], sizes = [8, 1], strides = [1, 1]} : vector<8x64xf32> to vector<8x1xf32>
    %43 = vector.extract_strided_slice %11 {offsets = [0, 25], sizes = [8, 1], strides = [1, 1]} : vector<8x64xf32> to vector<8x1xf32>
    %44 = vector.extract_strided_slice %11 {offsets = [0, 26], sizes = [8, 1], strides = [1, 1]} : vector<8x64xf32> to vector<8x1xf32>
    %45 = vector.extract_strided_slice %11 {offsets = [0, 27], sizes = [8, 1], strides = [1, 1]} : vector<8x64xf32> to vector<8x1xf32>
    %46 = vector.extract_strided_slice %11 {offsets = [0, 28], sizes = [8, 1], strides = [1, 1]} : vector<8x64xf32> to vector<8x1xf32>
    %47 = vector.extract_strided_slice %11 {offsets = [0, 29], sizes = [8, 1], strides = [1, 1]} : vector<8x64xf32> to vector<8x1xf32>
    %48 = vector.extract_strided_slice %11 {offsets = [0, 30], sizes = [8, 1], strides = [1, 1]} : vector<8x64xf32> to vector<8x1xf32>
    %49 = vector.extract_strided_slice %11 {offsets = [0, 31], sizes = [8, 1], strides = [1, 1]} : vector<8x64xf32> to vector<8x1xf32>
    %50 = vector.extract_strided_slice %11 {offsets = [0, 32], sizes = [8, 1], strides = [1, 1]} : vector<8x64xf32> to vector<8x1xf32>
    %51 = vector.extract_strided_slice %11 {offsets = [0, 33], sizes = [8, 1], strides = [1, 1]} : vector<8x64xf32> to vector<8x1xf32>
    %52 = vector.extract_strided_slice %11 {offsets = [0, 34], sizes = [8, 1], strides = [1, 1]} : vector<8x64xf32> to vector<8x1xf32>
    %53 = vector.extract_strided_slice %11 {offsets = [0, 35], sizes = [8, 1], strides = [1, 1]} : vector<8x64xf32> to vector<8x1xf32>
    %54 = vector.extract_strided_slice %11 {offsets = [0, 36], sizes = [8, 1], strides = [1, 1]} : vector<8x64xf32> to vector<8x1xf32>
    %55 = vector.extract_strided_slice %11 {offsets = [0, 37], sizes = [8, 1], strides = [1, 1]} : vector<8x64xf32> to vector<8x1xf32>
    %56 = vector.extract_strided_slice %11 {offsets = [0, 38], sizes = [8, 1], strides = [1, 1]} : vector<8x64xf32> to vector<8x1xf32>
    %57 = vector.extract_strided_slice %11 {offsets = [0, 39], sizes = [8, 1], strides = [1, 1]} : vector<8x64xf32> to vector<8x1xf32>
    %58 = vector.extract_strided_slice %11 {offsets = [0, 40], sizes = [8, 1], strides = [1, 1]} : vector<8x64xf32> to vector<8x1xf32>
    %59 = vector.extract_strided_slice %11 {offsets = [0, 41], sizes = [8, 1], strides = [1, 1]} : vector<8x64xf32> to vector<8x1xf32>
    %60 = vector.extract_strided_slice %11 {offsets = [0, 42], sizes = [8, 1], strides = [1, 1]} : vector<8x64xf32> to vector<8x1xf32>
    %61 = vector.extract_strided_slice %11 {offsets = [0, 43], sizes = [8, 1], strides = [1, 1]} : vector<8x64xf32> to vector<8x1xf32>
    %62 = vector.extract_strided_slice %11 {offsets = [0, 44], sizes = [8, 1], strides = [1, 1]} : vector<8x64xf32> to vector<8x1xf32>
    %63 = vector.extract_strided_slice %11 {offsets = [0, 45], sizes = [8, 1], strides = [1, 1]} : vector<8x64xf32> to vector<8x1xf32>
    %64 = vector.extract_strided_slice %11 {offsets = [0, 46], sizes = [8, 1], strides = [1, 1]} : vector<8x64xf32> to vector<8x1xf32>
    %65 = vector.extract_strided_slice %11 {offsets = [0, 47], sizes = [8, 1], strides = [1, 1]} : vector<8x64xf32> to vector<8x1xf32>
    %66 = vector.extract_strided_slice %11 {offsets = [0, 48], sizes = [8, 1], strides = [1, 1]} : vector<8x64xf32> to vector<8x1xf32>
    %67 = vector.extract_strided_slice %11 {offsets = [0, 49], sizes = [8, 1], strides = [1, 1]} : vector<8x64xf32> to vector<8x1xf32>
    %68 = vector.extract_strided_slice %11 {offsets = [0, 50], sizes = [8, 1], strides = [1, 1]} : vector<8x64xf32> to vector<8x1xf32>
    %69 = vector.extract_strided_slice %11 {offsets = [0, 51], sizes = [8, 1], strides = [1, 1]} : vector<8x64xf32> to vector<8x1xf32>
    %70 = vector.extract_strided_slice %11 {offsets = [0, 52], sizes = [8, 1], strides = [1, 1]} : vector<8x64xf32> to vector<8x1xf32>
    %71 = vector.extract_strided_slice %11 {offsets = [0, 53], sizes = [8, 1], strides = [1, 1]} : vector<8x64xf32> to vector<8x1xf32>
    %72 = vector.extract_strided_slice %11 {offsets = [0, 54], sizes = [8, 1], strides = [1, 1]} : vector<8x64xf32> to vector<8x1xf32>
    %73 = vector.extract_strided_slice %11 {offsets = [0, 55], sizes = [8, 1], strides = [1, 1]} : vector<8x64xf32> to vector<8x1xf32>
    %74 = vector.extract_strided_slice %11 {offsets = [0, 56], sizes = [8, 1], strides = [1, 1]} : vector<8x64xf32> to vector<8x1xf32>
    %75 = vector.extract_strided_slice %11 {offsets = [0, 57], sizes = [8, 1], strides = [1, 1]} : vector<8x64xf32> to vector<8x1xf32>
    %76 = vector.extract_strided_slice %11 {offsets = [0, 58], sizes = [8, 1], strides = [1, 1]} : vector<8x64xf32> to vector<8x1xf32>
    %77 = vector.extract_strided_slice %11 {offsets = [0, 59], sizes = [8, 1], strides = [1, 1]} : vector<8x64xf32> to vector<8x1xf32>
    %78 = vector.extract_strided_slice %11 {offsets = [0, 60], sizes = [8, 1], strides = [1, 1]} : vector<8x64xf32> to vector<8x1xf32>
    %79 = vector.extract_strided_slice %11 {offsets = [0, 61], sizes = [8, 1], strides = [1, 1]} : vector<8x64xf32> to vector<8x1xf32>
    %80 = vector.extract_strided_slice %11 {offsets = [0, 62], sizes = [8, 1], strides = [1, 1]} : vector<8x64xf32> to vector<8x1xf32>
    %81 = vector.extract_strided_slice %11 {offsets = [0, 63], sizes = [8, 1], strides = [1, 1]} : vector<8x64xf32> to vector<8x1xf32>
    %82 = vector.extract_strided_slice %18 {offsets = [0, 0], sizes = [8, 1], strides = [1, 1]} : vector<8x64xf32> to vector<8x1xf32>
    %83 = vector.extract_strided_slice %18 {offsets = [0, 1], sizes = [8, 1], strides = [1, 1]} : vector<8x64xf32> to vector<8x1xf32>
    %84 = vector.extract_strided_slice %18 {offsets = [0, 2], sizes = [8, 1], strides = [1, 1]} : vector<8x64xf32> to vector<8x1xf32>
    %85 = vector.extract_strided_slice %18 {offsets = [0, 3], sizes = [8, 1], strides = [1, 1]} : vector<8x64xf32> to vector<8x1xf32>
    %86 = vector.extract_strided_slice %18 {offsets = [0, 4], sizes = [8, 1], strides = [1, 1]} : vector<8x64xf32> to vector<8x1xf32>
    %87 = vector.extract_strided_slice %18 {offsets = [0, 5], sizes = [8, 1], strides = [1, 1]} : vector<8x64xf32> to vector<8x1xf32>
    %88 = vector.extract_strided_slice %18 {offsets = [0, 6], sizes = [8, 1], strides = [1, 1]} : vector<8x64xf32> to vector<8x1xf32>
    %89 = vector.extract_strided_slice %18 {offsets = [0, 7], sizes = [8, 1], strides = [1, 1]} : vector<8x64xf32> to vector<8x1xf32>
    %90 = vector.extract_strided_slice %18 {offsets = [0, 8], sizes = [8, 1], strides = [1, 1]} : vector<8x64xf32> to vector<8x1xf32>
    %91 = vector.extract_strided_slice %18 {offsets = [0, 9], sizes = [8, 1], strides = [1, 1]} : vector<8x64xf32> to vector<8x1xf32>
    %92 = vector.extract_strided_slice %18 {offsets = [0, 10], sizes = [8, 1], strides = [1, 1]} : vector<8x64xf32> to vector<8x1xf32>
    %93 = vector.extract_strided_slice %18 {offsets = [0, 11], sizes = [8, 1], strides = [1, 1]} : vector<8x64xf32> to vector<8x1xf32>
    %94 = vector.extract_strided_slice %18 {offsets = [0, 12], sizes = [8, 1], strides = [1, 1]} : vector<8x64xf32> to vector<8x1xf32>
    %95 = vector.extract_strided_slice %18 {offsets = [0, 13], sizes = [8, 1], strides = [1, 1]} : vector<8x64xf32> to vector<8x1xf32>
    %96 = vector.extract_strided_slice %18 {offsets = [0, 14], sizes = [8, 1], strides = [1, 1]} : vector<8x64xf32> to vector<8x1xf32>
    %97 = vector.extract_strided_slice %18 {offsets = [0, 15], sizes = [8, 1], strides = [1, 1]} : vector<8x64xf32> to vector<8x1xf32>
    %98 = vector.extract_strided_slice %18 {offsets = [0, 16], sizes = [8, 1], strides = [1, 1]} : vector<8x64xf32> to vector<8x1xf32>
    %99 = vector.extract_strided_slice %18 {offsets = [0, 17], sizes = [8, 1], strides = [1, 1]} : vector<8x64xf32> to vector<8x1xf32>
    %100 = vector.extract_strided_slice %18 {offsets = [0, 18], sizes = [8, 1], strides = [1, 1]} : vector<8x64xf32> to vector<8x1xf32>
    %101 = vector.extract_strided_slice %18 {offsets = [0, 19], sizes = [8, 1], strides = [1, 1]} : vector<8x64xf32> to vector<8x1xf32>
    %102 = vector.extract_strided_slice %18 {offsets = [0, 20], sizes = [8, 1], strides = [1, 1]} : vector<8x64xf32> to vector<8x1xf32>
    %103 = vector.extract_strided_slice %18 {offsets = [0, 21], sizes = [8, 1], strides = [1, 1]} : vector<8x64xf32> to vector<8x1xf32>
    %104 = vector.extract_strided_slice %18 {offsets = [0, 22], sizes = [8, 1], strides = [1, 1]} : vector<8x64xf32> to vector<8x1xf32>
    %105 = vector.extract_strided_slice %18 {offsets = [0, 23], sizes = [8, 1], strides = [1, 1]} : vector<8x64xf32> to vector<8x1xf32>
    %106 = vector.extract_strided_slice %18 {offsets = [0, 24], sizes = [8, 1], strides = [1, 1]} : vector<8x64xf32> to vector<8x1xf32>
    %107 = vector.extract_strided_slice %18 {offsets = [0, 25], sizes = [8, 1], strides = [1, 1]} : vector<8x64xf32> to vector<8x1xf32>
    %108 = vector.extract_strided_slice %18 {offsets = [0, 26], sizes = [8, 1], strides = [1, 1]} : vector<8x64xf32> to vector<8x1xf32>
    %109 = vector.extract_strided_slice %18 {offsets = [0, 27], sizes = [8, 1], strides = [1, 1]} : vector<8x64xf32> to vector<8x1xf32>
    %110 = vector.extract_strided_slice %18 {offsets = [0, 28], sizes = [8, 1], strides = [1, 1]} : vector<8x64xf32> to vector<8x1xf32>
    %111 = vector.extract_strided_slice %18 {offsets = [0, 29], sizes = [8, 1], strides = [1, 1]} : vector<8x64xf32> to vector<8x1xf32>
    %112 = vector.extract_strided_slice %18 {offsets = [0, 30], sizes = [8, 1], strides = [1, 1]} : vector<8x64xf32> to vector<8x1xf32>
    %113 = vector.extract_strided_slice %18 {offsets = [0, 31], sizes = [8, 1], strides = [1, 1]} : vector<8x64xf32> to vector<8x1xf32>
    %114 = vector.extract_strided_slice %18 {offsets = [0, 32], sizes = [8, 1], strides = [1, 1]} : vector<8x64xf32> to vector<8x1xf32>
    %115 = vector.extract_strided_slice %18 {offsets = [0, 33], sizes = [8, 1], strides = [1, 1]} : vector<8x64xf32> to vector<8x1xf32>
    %116 = vector.extract_strided_slice %18 {offsets = [0, 34], sizes = [8, 1], strides = [1, 1]} : vector<8x64xf32> to vector<8x1xf32>
    %117 = vector.extract_strided_slice %18 {offsets = [0, 35], sizes = [8, 1], strides = [1, 1]} : vector<8x64xf32> to vector<8x1xf32>
    %118 = vector.extract_strided_slice %18 {offsets = [0, 36], sizes = [8, 1], strides = [1, 1]} : vector<8x64xf32> to vector<8x1xf32>
    %119 = vector.extract_strided_slice %18 {offsets = [0, 37], sizes = [8, 1], strides = [1, 1]} : vector<8x64xf32> to vector<8x1xf32>
    %120 = vector.extract_strided_slice %18 {offsets = [0, 38], sizes = [8, 1], strides = [1, 1]} : vector<8x64xf32> to vector<8x1xf32>
    %121 = vector.extract_strided_slice %18 {offsets = [0, 39], sizes = [8, 1], strides = [1, 1]} : vector<8x64xf32> to vector<8x1xf32>
    %122 = vector.extract_strided_slice %18 {offsets = [0, 40], sizes = [8, 1], strides = [1, 1]} : vector<8x64xf32> to vector<8x1xf32>
    %123 = vector.extract_strided_slice %18 {offsets = [0, 41], sizes = [8, 1], strides = [1, 1]} : vector<8x64xf32> to vector<8x1xf32>
    %124 = vector.extract_strided_slice %18 {offsets = [0, 42], sizes = [8, 1], strides = [1, 1]} : vector<8x64xf32> to vector<8x1xf32>
    %125 = vector.extract_strided_slice %18 {offsets = [0, 43], sizes = [8, 1], strides = [1, 1]} : vector<8x64xf32> to vector<8x1xf32>
    %126 = vector.extract_strided_slice %18 {offsets = [0, 44], sizes = [8, 1], strides = [1, 1]} : vector<8x64xf32> to vector<8x1xf32>
    %127 = vector.extract_strided_slice %18 {offsets = [0, 45], sizes = [8, 1], strides = [1, 1]} : vector<8x64xf32> to vector<8x1xf32>
    %128 = vector.extract_strided_slice %18 {offsets = [0, 46], sizes = [8, 1], strides = [1, 1]} : vector<8x64xf32> to vector<8x1xf32>
    %129 = vector.extract_strided_slice %18 {offsets = [0, 47], sizes = [8, 1], strides = [1, 1]} : vector<8x64xf32> to vector<8x1xf32>
    %130 = vector.extract_strided_slice %18 {offsets = [0, 48], sizes = [8, 1], strides = [1, 1]} : vector<8x64xf32> to vector<8x1xf32>
    %131 = vector.extract_strided_slice %18 {offsets = [0, 49], sizes = [8, 1], strides = [1, 1]} : vector<8x64xf32> to vector<8x1xf32>
    %132 = vector.extract_strided_slice %18 {offsets = [0, 50], sizes = [8, 1], strides = [1, 1]} : vector<8x64xf32> to vector<8x1xf32>
    %133 = vector.extract_strided_slice %18 {offsets = [0, 51], sizes = [8, 1], strides = [1, 1]} : vector<8x64xf32> to vector<8x1xf32>
    %134 = vector.extract_strided_slice %18 {offsets = [0, 52], sizes = [8, 1], strides = [1, 1]} : vector<8x64xf32> to vector<8x1xf32>
    %135 = vector.extract_strided_slice %18 {offsets = [0, 53], sizes = [8, 1], strides = [1, 1]} : vector<8x64xf32> to vector<8x1xf32>
    %136 = vector.extract_strided_slice %18 {offsets = [0, 54], sizes = [8, 1], strides = [1, 1]} : vector<8x64xf32> to vector<8x1xf32>
    %137 = vector.extract_strided_slice %18 {offsets = [0, 55], sizes = [8, 1], strides = [1, 1]} : vector<8x64xf32> to vector<8x1xf32>
    %138 = vector.extract_strided_slice %18 {offsets = [0, 56], sizes = [8, 1], strides = [1, 1]} : vector<8x64xf32> to vector<8x1xf32>
    %139 = vector.extract_strided_slice %18 {offsets = [0, 57], sizes = [8, 1], strides = [1, 1]} : vector<8x64xf32> to vector<8x1xf32>
    %140 = vector.extract_strided_slice %18 {offsets = [0, 58], sizes = [8, 1], strides = [1, 1]} : vector<8x64xf32> to vector<8x1xf32>
    %141 = vector.extract_strided_slice %18 {offsets = [0, 59], sizes = [8, 1], strides = [1, 1]} : vector<8x64xf32> to vector<8x1xf32>
    %142 = vector.extract_strided_slice %18 {offsets = [0, 60], sizes = [8, 1], strides = [1, 1]} : vector<8x64xf32> to vector<8x1xf32>
    %143 = vector.extract_strided_slice %18 {offsets = [0, 61], sizes = [8, 1], strides = [1, 1]} : vector<8x64xf32> to vector<8x1xf32>
    %144 = vector.extract_strided_slice %18 {offsets = [0, 62], sizes = [8, 1], strides = [1, 1]} : vector<8x64xf32> to vector<8x1xf32>
    %145 = vector.extract_strided_slice %18 {offsets = [0, 63], sizes = [8, 1], strides = [1, 1]} : vector<8x64xf32> to vector<8x1xf32>
    %c0_4 = arith.constant 0 : index
    %c0_5 = arith.constant 0 : index
    %146 = vector.load %arg1[%c0_4, %c0_5] : memref<8x16xf32, #tpu.memory_space<vmem>>, vector<8x16xf32>
    %147 = vector.shape_cast %82 : vector<8x1xf32> to vector<8x1xf32>
    %148 = vector.broadcast %147 : vector<8x1xf32> to vector<8x16xf32>
    %149 = vector.broadcast %19 : vector<8x1xf32> to vector<8x16xf32>
    %150 = arith.cmpf oge, %146, %149 : vector<8x16xf32>
    %151 = vector.shape_cast %83 : vector<8x1xf32> to vector<8x1xf32>
    %152 = vector.broadcast %151 : vector<8x1xf32> to vector<8x16xf32>
    %153 = arith.select %150, %152, %148 : vector<8x16xi1>, vector<8x16xf32>
    %154 = vector.broadcast %20 : vector<8x1xf32> to vector<8x16xf32>
    %155 = arith.cmpf oge, %146, %154 : vector<8x16xf32>
    %156 = vector.shape_cast %84 : vector<8x1xf32> to vector<8x1xf32>
    %157 = vector.broadcast %156 : vector<8x1xf32> to vector<8x16xf32>
    %158 = arith.select %155, %157, %153 : vector<8x16xi1>, vector<8x16xf32>
    %159 = vector.broadcast %21 : vector<8x1xf32> to vector<8x16xf32>
    %160 = arith.cmpf oge, %146, %159 : vector<8x16xf32>
    %161 = vector.shape_cast %85 : vector<8x1xf32> to vector<8x1xf32>
    %162 = vector.broadcast %161 : vector<8x1xf32> to vector<8x16xf32>
    %163 = arith.select %160, %162, %158 : vector<8x16xi1>, vector<8x16xf32>
    %164 = vector.broadcast %22 : vector<8x1xf32> to vector<8x16xf32>
    %165 = arith.cmpf oge, %146, %164 : vector<8x16xf32>
    %166 = vector.shape_cast %86 : vector<8x1xf32> to vector<8x1xf32>
    %167 = vector.broadcast %166 : vector<8x1xf32> to vector<8x16xf32>
    %168 = arith.select %165, %167, %163 : vector<8x16xi1>, vector<8x16xf32>
    %169 = vector.broadcast %23 : vector<8x1xf32> to vector<8x16xf32>
    %170 = arith.cmpf oge, %146, %169 : vector<8x16xf32>
    %171 = vector.shape_cast %87 : vector<8x1xf32> to vector<8x1xf32>
    %172 = vector.broadcast %171 : vector<8x1xf32> to vector<8x16xf32>
    %173 = arith.select %170, %172, %168 : vector<8x16xi1>, vector<8x16xf32>
    %174 = vector.broadcast %24 : vector<8x1xf32> to vector<8x16xf32>
    %175 = arith.cmpf oge, %146, %174 : vector<8x16xf32>
    %176 = vector.shape_cast %88 : vector<8x1xf32> to vector<8x1xf32>
    %177 = vector.broadcast %176 : vector<8x1xf32> to vector<8x16xf32>
    %178 = arith.select %175, %177, %173 : vector<8x16xi1>, vector<8x16xf32>
    %179 = vector.broadcast %25 : vector<8x1xf32> to vector<8x16xf32>
    %180 = arith.cmpf oge, %146, %179 : vector<8x16xf32>
    %181 = vector.shape_cast %89 : vector<8x1xf32> to vector<8x1xf32>
    %182 = vector.broadcast %181 : vector<8x1xf32> to vector<8x16xf32>
    %183 = arith.select %180, %182, %178 : vector<8x16xi1>, vector<8x16xf32>
    %184 = vector.broadcast %26 : vector<8x1xf32> to vector<8x16xf32>
    %185 = arith.cmpf oge, %146, %184 : vector<8x16xf32>
    %186 = vector.shape_cast %90 : vector<8x1xf32> to vector<8x1xf32>
    %187 = vector.broadcast %186 : vector<8x1xf32> to vector<8x16xf32>
    %188 = arith.select %185, %187, %183 : vector<8x16xi1>, vector<8x16xf32>
    %189 = vector.broadcast %27 : vector<8x1xf32> to vector<8x16xf32>
    %190 = arith.cmpf oge, %146, %189 : vector<8x16xf32>
    %191 = vector.shape_cast %91 : vector<8x1xf32> to vector<8x1xf32>
    %192 = vector.broadcast %191 : vector<8x1xf32> to vector<8x16xf32>
    %193 = arith.select %190, %192, %188 : vector<8x16xi1>, vector<8x16xf32>
    %194 = vector.broadcast %28 : vector<8x1xf32> to vector<8x16xf32>
    %195 = arith.cmpf oge, %146, %194 : vector<8x16xf32>
    %196 = vector.shape_cast %92 : vector<8x1xf32> to vector<8x1xf32>
    %197 = vector.broadcast %196 : vector<8x1xf32> to vector<8x16xf32>
    %198 = arith.select %195, %197, %193 : vector<8x16xi1>, vector<8x16xf32>
    %199 = vector.broadcast %29 : vector<8x1xf32> to vector<8x16xf32>
    %200 = arith.cmpf oge, %146, %199 : vector<8x16xf32>
    %201 = vector.shape_cast %93 : vector<8x1xf32> to vector<8x1xf32>
    %202 = vector.broadcast %201 : vector<8x1xf32> to vector<8x16xf32>
    %203 = arith.select %200, %202, %198 : vector<8x16xi1>, vector<8x16xf32>
    %204 = vector.broadcast %30 : vector<8x1xf32> to vector<8x16xf32>
    %205 = arith.cmpf oge, %146, %204 : vector<8x16xf32>
    %206 = vector.shape_cast %94 : vector<8x1xf32> to vector<8x1xf32>
    %207 = vector.broadcast %206 : vector<8x1xf32> to vector<8x16xf32>
    %208 = arith.select %205, %207, %203 : vector<8x16xi1>, vector<8x16xf32>
    %209 = vector.broadcast %31 : vector<8x1xf32> to vector<8x16xf32>
    %210 = arith.cmpf oge, %146, %209 : vector<8x16xf32>
    %211 = vector.shape_cast %95 : vector<8x1xf32> to vector<8x1xf32>
    %212 = vector.broadcast %211 : vector<8x1xf32> to vector<8x16xf32>
    %213 = arith.select %210, %212, %208 : vector<8x16xi1>, vector<8x16xf32>
    %214 = vector.broadcast %32 : vector<8x1xf32> to vector<8x16xf32>
    %215 = arith.cmpf oge, %146, %214 : vector<8x16xf32>
    %216 = vector.shape_cast %96 : vector<8x1xf32> to vector<8x1xf32>
    %217 = vector.broadcast %216 : vector<8x1xf32> to vector<8x16xf32>
    %218 = arith.select %215, %217, %213 : vector<8x16xi1>, vector<8x16xf32>
    %219 = vector.broadcast %33 : vector<8x1xf32> to vector<8x16xf32>
    %220 = arith.cmpf oge, %146, %219 : vector<8x16xf32>
    %221 = vector.shape_cast %97 : vector<8x1xf32> to vector<8x1xf32>
    %222 = vector.broadcast %221 : vector<8x1xf32> to vector<8x16xf32>
    %223 = arith.select %220, %222, %218 : vector<8x16xi1>, vector<8x16xf32>
    %224 = vector.broadcast %34 : vector<8x1xf32> to vector<8x16xf32>
    %225 = arith.cmpf oge, %146, %224 : vector<8x16xf32>
    %226 = vector.shape_cast %98 : vector<8x1xf32> to vector<8x1xf32>
    %227 = vector.broadcast %226 : vector<8x1xf32> to vector<8x16xf32>
    %228 = arith.select %225, %227, %223 : vector<8x16xi1>, vector<8x16xf32>
    %229 = vector.broadcast %35 : vector<8x1xf32> to vector<8x16xf32>
    %230 = arith.cmpf oge, %146, %229 : vector<8x16xf32>
    %231 = vector.shape_cast %99 : vector<8x1xf32> to vector<8x1xf32>
    %232 = vector.broadcast %231 : vector<8x1xf32> to vector<8x16xf32>
    %233 = arith.select %230, %232, %228 : vector<8x16xi1>, vector<8x16xf32>
    %234 = vector.broadcast %36 : vector<8x1xf32> to vector<8x16xf32>
    %235 = arith.cmpf oge, %146, %234 : vector<8x16xf32>
    %236 = vector.shape_cast %100 : vector<8x1xf32> to vector<8x1xf32>
    %237 = vector.broadcast %236 : vector<8x1xf32> to vector<8x16xf32>
    %238 = arith.select %235, %237, %233 : vector<8x16xi1>, vector<8x16xf32>
    %239 = vector.broadcast %37 : vector<8x1xf32> to vector<8x16xf32>
    %240 = arith.cmpf oge, %146, %239 : vector<8x16xf32>
    %241 = vector.shape_cast %101 : vector<8x1xf32> to vector<8x1xf32>
    %242 = vector.broadcast %241 : vector<8x1xf32> to vector<8x16xf32>
    %243 = arith.select %240, %242, %238 : vector<8x16xi1>, vector<8x16xf32>
    %244 = vector.broadcast %38 : vector<8x1xf32> to vector<8x16xf32>
    %245 = arith.cmpf oge, %146, %244 : vector<8x16xf32>
    %246 = vector.shape_cast %102 : vector<8x1xf32> to vector<8x1xf32>
    %247 = vector.broadcast %246 : vector<8x1xf32> to vector<8x16xf32>
    %248 = arith.select %245, %247, %243 : vector<8x16xi1>, vector<8x16xf32>
    %249 = vector.broadcast %39 : vector<8x1xf32> to vector<8x16xf32>
    %250 = arith.cmpf oge, %146, %249 : vector<8x16xf32>
    %251 = vector.shape_cast %103 : vector<8x1xf32> to vector<8x1xf32>
    %252 = vector.broadcast %251 : vector<8x1xf32> to vector<8x16xf32>
    %253 = arith.select %250, %252, %248 : vector<8x16xi1>, vector<8x16xf32>
    %254 = vector.broadcast %40 : vector<8x1xf32> to vector<8x16xf32>
    %255 = arith.cmpf oge, %146, %254 : vector<8x16xf32>
    %256 = vector.shape_cast %104 : vector<8x1xf32> to vector<8x1xf32>
    %257 = vector.broadcast %256 : vector<8x1xf32> to vector<8x16xf32>
    %258 = arith.select %255, %257, %253 : vector<8x16xi1>, vector<8x16xf32>
    %259 = vector.broadcast %41 : vector<8x1xf32> to vector<8x16xf32>
    %260 = arith.cmpf oge, %146, %259 : vector<8x16xf32>
    %261 = vector.shape_cast %105 : vector<8x1xf32> to vector<8x1xf32>
    %262 = vector.broadcast %261 : vector<8x1xf32> to vector<8x16xf32>
    %263 = arith.select %260, %262, %258 : vector<8x16xi1>, vector<8x16xf32>
    %264 = vector.broadcast %42 : vector<8x1xf32> to vector<8x16xf32>
    %265 = arith.cmpf oge, %146, %264 : vector<8x16xf32>
    %266 = vector.shape_cast %106 : vector<8x1xf32> to vector<8x1xf32>
    %267 = vector.broadcast %266 : vector<8x1xf32> to vector<8x16xf32>
    %268 = arith.select %265, %267, %263 : vector<8x16xi1>, vector<8x16xf32>
    %269 = vector.broadcast %43 : vector<8x1xf32> to vector<8x16xf32>
    %270 = arith.cmpf oge, %146, %269 : vector<8x16xf32>
    %271 = vector.shape_cast %107 : vector<8x1xf32> to vector<8x1xf32>
    %272 = vector.broadcast %271 : vector<8x1xf32> to vector<8x16xf32>
    %273 = arith.select %270, %272, %268 : vector<8x16xi1>, vector<8x16xf32>
    %274 = vector.broadcast %44 : vector<8x1xf32> to vector<8x16xf32>
    %275 = arith.cmpf oge, %146, %274 : vector<8x16xf32>
    %276 = vector.shape_cast %108 : vector<8x1xf32> to vector<8x1xf32>
    %277 = vector.broadcast %276 : vector<8x1xf32> to vector<8x16xf32>
    %278 = arith.select %275, %277, %273 : vector<8x16xi1>, vector<8x16xf32>
    %279 = vector.broadcast %45 : vector<8x1xf32> to vector<8x16xf32>
    %280 = arith.cmpf oge, %146, %279 : vector<8x16xf32>
    %281 = vector.shape_cast %109 : vector<8x1xf32> to vector<8x1xf32>
    %282 = vector.broadcast %281 : vector<8x1xf32> to vector<8x16xf32>
    %283 = arith.select %280, %282, %278 : vector<8x16xi1>, vector<8x16xf32>
    %284 = vector.broadcast %46 : vector<8x1xf32> to vector<8x16xf32>
    %285 = arith.cmpf oge, %146, %284 : vector<8x16xf32>
    %286 = vector.shape_cast %110 : vector<8x1xf32> to vector<8x1xf32>
    %287 = vector.broadcast %286 : vector<8x1xf32> to vector<8x16xf32>
    %288 = arith.select %285, %287, %283 : vector<8x16xi1>, vector<8x16xf32>
    %289 = vector.broadcast %47 : vector<8x1xf32> to vector<8x16xf32>
    %290 = arith.cmpf oge, %146, %289 : vector<8x16xf32>
    %291 = vector.shape_cast %111 : vector<8x1xf32> to vector<8x1xf32>
    %292 = vector.broadcast %291 : vector<8x1xf32> to vector<8x16xf32>
    %293 = arith.select %290, %292, %288 : vector<8x16xi1>, vector<8x16xf32>
    %294 = vector.broadcast %48 : vector<8x1xf32> to vector<8x16xf32>
    %295 = arith.cmpf oge, %146, %294 : vector<8x16xf32>
    %296 = vector.shape_cast %112 : vector<8x1xf32> to vector<8x1xf32>
    %297 = vector.broadcast %296 : vector<8x1xf32> to vector<8x16xf32>
    %298 = arith.select %295, %297, %293 : vector<8x16xi1>, vector<8x16xf32>
    %299 = vector.broadcast %49 : vector<8x1xf32> to vector<8x16xf32>
    %300 = arith.cmpf oge, %146, %299 : vector<8x16xf32>
    %301 = vector.shape_cast %113 : vector<8x1xf32> to vector<8x1xf32>
    %302 = vector.broadcast %301 : vector<8x1xf32> to vector<8x16xf32>
    %303 = arith.select %300, %302, %298 : vector<8x16xi1>, vector<8x16xf32>
    %304 = vector.broadcast %50 : vector<8x1xf32> to vector<8x16xf32>
    %305 = arith.cmpf oge, %146, %304 : vector<8x16xf32>
    %306 = vector.shape_cast %114 : vector<8x1xf32> to vector<8x1xf32>
    %307 = vector.broadcast %306 : vector<8x1xf32> to vector<8x16xf32>
    %308 = arith.select %305, %307, %303 : vector<8x16xi1>, vector<8x16xf32>
    %309 = vector.broadcast %51 : vector<8x1xf32> to vector<8x16xf32>
    %310 = arith.cmpf oge, %146, %309 : vector<8x16xf32>
    %311 = vector.shape_cast %115 : vector<8x1xf32> to vector<8x1xf32>
    %312 = vector.broadcast %311 : vector<8x1xf32> to vector<8x16xf32>
    %313 = arith.select %310, %312, %308 : vector<8x16xi1>, vector<8x16xf32>
    %314 = vector.broadcast %52 : vector<8x1xf32> to vector<8x16xf32>
    %315 = arith.cmpf oge, %146, %314 : vector<8x16xf32>
    %316 = vector.shape_cast %116 : vector<8x1xf32> to vector<8x1xf32>
    %317 = vector.broadcast %316 : vector<8x1xf32> to vector<8x16xf32>
    %318 = arith.select %315, %317, %313 : vector<8x16xi1>, vector<8x16xf32>
    %319 = vector.broadcast %53 : vector<8x1xf32> to vector<8x16xf32>
    %320 = arith.cmpf oge, %146, %319 : vector<8x16xf32>
    %321 = vector.shape_cast %117 : vector<8x1xf32> to vector<8x1xf32>
    %322 = vector.broadcast %321 : vector<8x1xf32> to vector<8x16xf32>
    %323 = arith.select %320, %322, %318 : vector<8x16xi1>, vector<8x16xf32>
    %324 = vector.broadcast %54 : vector<8x1xf32> to vector<8x16xf32>
    %325 = arith.cmpf oge, %146, %324 : vector<8x16xf32>
    %326 = vector.shape_cast %118 : vector<8x1xf32> to vector<8x1xf32>
    %327 = vector.broadcast %326 : vector<8x1xf32> to vector<8x16xf32>
    %328 = arith.select %325, %327, %323 : vector<8x16xi1>, vector<8x16xf32>
    %329 = vector.broadcast %55 : vector<8x1xf32> to vector<8x16xf32>
    %330 = arith.cmpf oge, %146, %329 : vector<8x16xf32>
    %331 = vector.shape_cast %119 : vector<8x1xf32> to vector<8x1xf32>
    %332 = vector.broadcast %331 : vector<8x1xf32> to vector<8x16xf32>
    %333 = arith.select %330, %332, %328 : vector<8x16xi1>, vector<8x16xf32>
    %334 = vector.broadcast %56 : vector<8x1xf32> to vector<8x16xf32>
    %335 = arith.cmpf oge, %146, %334 : vector<8x16xf32>
    %336 = vector.shape_cast %120 : vector<8x1xf32> to vector<8x1xf32>
    %337 = vector.broadcast %336 : vector<8x1xf32> to vector<8x16xf32>
    %338 = arith.select %335, %337, %333 : vector<8x16xi1>, vector<8x16xf32>
    %339 = vector.broadcast %57 : vector<8x1xf32> to vector<8x16xf32>
    %340 = arith.cmpf oge, %146, %339 : vector<8x16xf32>
    %341 = vector.shape_cast %121 : vector<8x1xf32> to vector<8x1xf32>
    %342 = vector.broadcast %341 : vector<8x1xf32> to vector<8x16xf32>
    %343 = arith.select %340, %342, %338 : vector<8x16xi1>, vector<8x16xf32>
    %344 = vector.broadcast %58 : vector<8x1xf32> to vector<8x16xf32>
    %345 = arith.cmpf oge, %146, %344 : vector<8x16xf32>
    %346 = vector.shape_cast %122 : vector<8x1xf32> to vector<8x1xf32>
    %347 = vector.broadcast %346 : vector<8x1xf32> to vector<8x16xf32>
    %348 = arith.select %345, %347, %343 : vector<8x16xi1>, vector<8x16xf32>
    %349 = vector.broadcast %59 : vector<8x1xf32> to vector<8x16xf32>
    %350 = arith.cmpf oge, %146, %349 : vector<8x16xf32>
    %351 = vector.shape_cast %123 : vector<8x1xf32> to vector<8x1xf32>
    %352 = vector.broadcast %351 : vector<8x1xf32> to vector<8x16xf32>
    %353 = arith.select %350, %352, %348 : vector<8x16xi1>, vector<8x16xf32>
    %354 = vector.broadcast %60 : vector<8x1xf32> to vector<8x16xf32>
    %355 = arith.cmpf oge, %146, %354 : vector<8x16xf32>
    %356 = vector.shape_cast %124 : vector<8x1xf32> to vector<8x1xf32>
    %357 = vector.broadcast %356 : vector<8x1xf32> to vector<8x16xf32>
    %358 = arith.select %355, %357, %353 : vector<8x16xi1>, vector<8x16xf32>
    %359 = vector.broadcast %61 : vector<8x1xf32> to vector<8x16xf32>
    %360 = arith.cmpf oge, %146, %359 : vector<8x16xf32>
    %361 = vector.shape_cast %125 : vector<8x1xf32> to vector<8x1xf32>
    %362 = vector.broadcast %361 : vector<8x1xf32> to vector<8x16xf32>
    %363 = arith.select %360, %362, %358 : vector<8x16xi1>, vector<8x16xf32>
    %364 = vector.broadcast %62 : vector<8x1xf32> to vector<8x16xf32>
    %365 = arith.cmpf oge, %146, %364 : vector<8x16xf32>
    %366 = vector.shape_cast %126 : vector<8x1xf32> to vector<8x1xf32>
    %367 = vector.broadcast %366 : vector<8x1xf32> to vector<8x16xf32>
    %368 = arith.select %365, %367, %363 : vector<8x16xi1>, vector<8x16xf32>
    %369 = vector.broadcast %63 : vector<8x1xf32> to vector<8x16xf32>
    %370 = arith.cmpf oge, %146, %369 : vector<8x16xf32>
    %371 = vector.shape_cast %127 : vector<8x1xf32> to vector<8x1xf32>
    %372 = vector.broadcast %371 : vector<8x1xf32> to vector<8x16xf32>
    %373 = arith.select %370, %372, %368 : vector<8x16xi1>, vector<8x16xf32>
    %374 = vector.broadcast %64 : vector<8x1xf32> to vector<8x16xf32>
    %375 = arith.cmpf oge, %146, %374 : vector<8x16xf32>
    %376 = vector.shape_cast %128 : vector<8x1xf32> to vector<8x1xf32>
    %377 = vector.broadcast %376 : vector<8x1xf32> to vector<8x16xf32>
    %378 = arith.select %375, %377, %373 : vector<8x16xi1>, vector<8x16xf32>
    %379 = vector.broadcast %65 : vector<8x1xf32> to vector<8x16xf32>
    %380 = arith.cmpf oge, %146, %379 : vector<8x16xf32>
    %381 = vector.shape_cast %129 : vector<8x1xf32> to vector<8x1xf32>
    %382 = vector.broadcast %381 : vector<8x1xf32> to vector<8x16xf32>
    %383 = arith.select %380, %382, %378 : vector<8x16xi1>, vector<8x16xf32>
    %384 = vector.broadcast %66 : vector<8x1xf32> to vector<8x16xf32>
    %385 = arith.cmpf oge, %146, %384 : vector<8x16xf32>
    %386 = vector.shape_cast %130 : vector<8x1xf32> to vector<8x1xf32>
    %387 = vector.broadcast %386 : vector<8x1xf32> to vector<8x16xf32>
    %388 = arith.select %385, %387, %383 : vector<8x16xi1>, vector<8x16xf32>
    %389 = vector.broadcast %67 : vector<8x1xf32> to vector<8x16xf32>
    %390 = arith.cmpf oge, %146, %389 : vector<8x16xf32>
    %391 = vector.shape_cast %131 : vector<8x1xf32> to vector<8x1xf32>
    %392 = vector.broadcast %391 : vector<8x1xf32> to vector<8x16xf32>
    %393 = arith.select %390, %392, %388 : vector<8x16xi1>, vector<8x16xf32>
    %394 = vector.broadcast %68 : vector<8x1xf32> to vector<8x16xf32>
    %395 = arith.cmpf oge, %146, %394 : vector<8x16xf32>
    %396 = vector.shape_cast %132 : vector<8x1xf32> to vector<8x1xf32>
    %397 = vector.broadcast %396 : vector<8x1xf32> to vector<8x16xf32>
    %398 = arith.select %395, %397, %393 : vector<8x16xi1>, vector<8x16xf32>
    %399 = vector.broadcast %69 : vector<8x1xf32> to vector<8x16xf32>
    %400 = arith.cmpf oge, %146, %399 : vector<8x16xf32>
    %401 = vector.shape_cast %133 : vector<8x1xf32> to vector<8x1xf32>
    %402 = vector.broadcast %401 : vector<8x1xf32> to vector<8x16xf32>
    %403 = arith.select %400, %402, %398 : vector<8x16xi1>, vector<8x16xf32>
    %404 = vector.broadcast %70 : vector<8x1xf32> to vector<8x16xf32>
    %405 = arith.cmpf oge, %146, %404 : vector<8x16xf32>
    %406 = vector.shape_cast %134 : vector<8x1xf32> to vector<8x1xf32>
    %407 = vector.broadcast %406 : vector<8x1xf32> to vector<8x16xf32>
    %408 = arith.select %405, %407, %403 : vector<8x16xi1>, vector<8x16xf32>
    %409 = vector.broadcast %71 : vector<8x1xf32> to vector<8x16xf32>
    %410 = arith.cmpf oge, %146, %409 : vector<8x16xf32>
    %411 = vector.shape_cast %135 : vector<8x1xf32> to vector<8x1xf32>
    %412 = vector.broadcast %411 : vector<8x1xf32> to vector<8x16xf32>
    %413 = arith.select %410, %412, %408 : vector<8x16xi1>, vector<8x16xf32>
    %414 = vector.broadcast %72 : vector<8x1xf32> to vector<8x16xf32>
    %415 = arith.cmpf oge, %146, %414 : vector<8x16xf32>
    %416 = vector.shape_cast %136 : vector<8x1xf32> to vector<8x1xf32>
    %417 = vector.broadcast %416 : vector<8x1xf32> to vector<8x16xf32>
    %418 = arith.select %415, %417, %413 : vector<8x16xi1>, vector<8x16xf32>
    %419 = vector.broadcast %73 : vector<8x1xf32> to vector<8x16xf32>
    %420 = arith.cmpf oge, %146, %419 : vector<8x16xf32>
    %421 = vector.shape_cast %137 : vector<8x1xf32> to vector<8x1xf32>
    %422 = vector.broadcast %421 : vector<8x1xf32> to vector<8x16xf32>
    %423 = arith.select %420, %422, %418 : vector<8x16xi1>, vector<8x16xf32>
    %424 = vector.broadcast %74 : vector<8x1xf32> to vector<8x16xf32>
    %425 = arith.cmpf oge, %146, %424 : vector<8x16xf32>
    %426 = vector.shape_cast %138 : vector<8x1xf32> to vector<8x1xf32>
    %427 = vector.broadcast %426 : vector<8x1xf32> to vector<8x16xf32>
    %428 = arith.select %425, %427, %423 : vector<8x16xi1>, vector<8x16xf32>
    %429 = vector.broadcast %75 : vector<8x1xf32> to vector<8x16xf32>
    %430 = arith.cmpf oge, %146, %429 : vector<8x16xf32>
    %431 = vector.shape_cast %139 : vector<8x1xf32> to vector<8x1xf32>
    %432 = vector.broadcast %431 : vector<8x1xf32> to vector<8x16xf32>
    %433 = arith.select %430, %432, %428 : vector<8x16xi1>, vector<8x16xf32>
    %434 = vector.broadcast %76 : vector<8x1xf32> to vector<8x16xf32>
    %435 = arith.cmpf oge, %146, %434 : vector<8x16xf32>
    %436 = vector.shape_cast %140 : vector<8x1xf32> to vector<8x1xf32>
    %437 = vector.broadcast %436 : vector<8x1xf32> to vector<8x16xf32>
    %438 = arith.select %435, %437, %433 : vector<8x16xi1>, vector<8x16xf32>
    %439 = vector.broadcast %77 : vector<8x1xf32> to vector<8x16xf32>
    %440 = arith.cmpf oge, %146, %439 : vector<8x16xf32>
    %441 = vector.shape_cast %141 : vector<8x1xf32> to vector<8x1xf32>
    %442 = vector.broadcast %441 : vector<8x1xf32> to vector<8x16xf32>
    %443 = arith.select %440, %442, %438 : vector<8x16xi1>, vector<8x16xf32>
    %444 = vector.broadcast %78 : vector<8x1xf32> to vector<8x16xf32>
    %445 = arith.cmpf oge, %146, %444 : vector<8x16xf32>
    %446 = vector.shape_cast %142 : vector<8x1xf32> to vector<8x1xf32>
    %447 = vector.broadcast %446 : vector<8x1xf32> to vector<8x16xf32>
    %448 = arith.select %445, %447, %443 : vector<8x16xi1>, vector<8x16xf32>
    %449 = vector.broadcast %79 : vector<8x1xf32> to vector<8x16xf32>
    %450 = arith.cmpf oge, %146, %449 : vector<8x16xf32>
    %451 = vector.shape_cast %143 : vector<8x1xf32> to vector<8x1xf32>
    %452 = vector.broadcast %451 : vector<8x1xf32> to vector<8x16xf32>
    %453 = arith.select %450, %452, %448 : vector<8x16xi1>, vector<8x16xf32>
    %454 = vector.broadcast %80 : vector<8x1xf32> to vector<8x16xf32>
    %455 = arith.cmpf oge, %146, %454 : vector<8x16xf32>
    %456 = vector.shape_cast %144 : vector<8x1xf32> to vector<8x1xf32>
    %457 = vector.broadcast %456 : vector<8x1xf32> to vector<8x16xf32>
    %458 = arith.select %455, %457, %453 : vector<8x16xi1>, vector<8x16xf32>
    %459 = vector.broadcast %81 : vector<8x1xf32> to vector<8x16xf32>
    %460 = arith.cmpf oge, %146, %459 : vector<8x16xf32>
    %461 = vector.shape_cast %145 : vector<8x1xf32> to vector<8x1xf32>
    %462 = vector.broadcast %461 : vector<8x1xf32> to vector<8x16xf32>
    %463 = arith.select %460, %462, %458 : vector<8x16xi1>, vector<8x16xf32>
    %c0_6 = arith.constant 0 : index
    %c0_7 = arith.constant 0 : index
    %464 = vector.load %arg3[%c0_6, %c0_7] : memref<8x16xf32, #tpu.memory_space<vmem>>, vector<8x16xf32>
    tpu.vector_store %arg3[%c0_6, %c0_7], %463 {strides = array<i32>} : memref<8x16xf32, #tpu.memory_space<vmem>>, vector<8x16xf32>,
    return
  }
  func.func @transform_0(%arg0: i32) -> (i32, i32) {
    %c0_i32 = arith.constant 0 : i32
    %c0_i32_0 = arith.constant 0 : i32
    return %arg0, %c0_i32 : i32, i32
  }
  func.func @transform_1(%arg0: i32) -> (i32, i32) {
    %c0_i32 = arith.constant 0 : i32
    %c0_i32_0 = arith.constant 0 : i32
    return %arg0, %c0_i32 : i32, i32
  }
  func.func @transform_2(%arg0: i32) -> (i32, i32) {
    %c0_i32 = arith.constant 0 : i32
    %c0_i32_0 = arith.constant 0 : i32
    return %arg0, %c0_i32 : i32, i32
  }
}

</mosaic_0001>

<bundles_post_ra>
// kernel: randomized_quantization_aug.3
= control target key start
LH: loop header
LB: loop body
LE: loop exit
PB: predicated region body
PF: predicated region fallthrough
CT: control target
= control target key end

     0   :  { %vm13_vm0 = vcmask 130048   ;;  %s1375_s0 = inlined_call_operand.vmem [shape: f32[8,16], index: 0, kind: input, shape index: {}]   ;;  %s1376_s1 = inlined_call_operand.vmem [shape: f32[8,256], index: 1, kind: input, shape index: {}]   ;;  %s1377_s2 = inlined_call_operand.hbm [shape: f32[8,16], index: 2, kind: output, shape index: {}]  }
   0x1   :  { %v1114_v0 = vld [vmem:[%s1375_s0] sm:$0xff]  ;;  %v22_v1 = vld [vmem:[%s1376_s1 + $0x8] sm:$0xff] }
   0x2   :  { %7 = vsyncpa [#allocation3], 0  ;;  %v14_v2 = vsel %vm13_vm0, %v1114_v0, inf  ;;  %s967_s13 = smov 64   ;;  %v17_v3 = vsel %vm13_vm0, %v1114_v0, -inf  ;;  %v968_v4 = vmov 8  }
   0x3   :  { %26 = vrot.lane.b32.xlu1 %v22_v1, %s967_s13  ;;  %15 = vmin.xlane.f32.xlu0 %v14_v2  ;;  %v969_v5 = vmov 2   ;;  %v970_v6 = vmov 1   ;;  %v21_v8 = vld [vmem:[%s1376_s1] sm:$0xff]  ;;  %v971_v13 = vmov 9   ;;  %v972_v14 = vmov 10   ;;  %s674_s20 = sshll.u32 %s1377_s2, 4  ;;  %s675_s20 = int_to_ptr.hbm [resolvable:$true] %s674_s20 }
   0x4   :  { %819 = vset.pattern.permute.xlu1 %v968_v4  ;;  %813 = vset.pattern.permute.xlu0 %v969_v5  ;;  %v973_v15 = vmov 3   ;;  %v974_v16 = vmov 13   ;;  %v975_v17 = vmov 15   ;;  %v976_v18 = vmov 4  }
   0x5   :  { %812 = vset.pattern.permute.xlu2 %v970_v6  ;;  %v977_v21 = vmov 14   ;;  %v978_v22 = vmov 71   ;;  %v979_v23 = vmov 5   ;;  %v980_v24 = vmov 64  }
   0x6   :  { %v981_v25 = vmov 6   ;;  %v982_v26 = vmov 76   ;;  %v983_v27 = vmov 7   ;;  %v984_v28 = vmov 81  }
   0x7   :  { %v985_v29 = vmov 66   ;;  %v986_v30 = vmov 11   ;;  %v987_v31 = vmov 20   ;;  %v988_v32 = vmov 67  }
   0x8   :  { %v989_v33 = vmov 12   ;;  %v990_v34 = vmov 86   ;;  %v991_v35 = vmov 68   ;;  %v992_v36 = vmov 16  }
   0x9   :  { %v993_v37 = vmov 25   ;;  %v994_v38 = vmov 69   ;;  %v995_v39 = vmov 17   ;;  %v996_v40 = vmov 91  }
   0xa   :  { %v997_v41 = vmov 70   ;;  %v998_v43 = vmov 65   ;;  %v999_v44 = vmov 30   ;;  %v1000_v45 = vmov 74  }
   0xb   :  { %18 = vmax.xlane.f32.xlu0 %v17_v3  ;;  %v1001_v47 = vmov 96   ;;  %v1002_v48 = vmov 72   ;;  %v1003_v49 = vmov 75   ;;  %v1004_v51 = vmov 35  }
   0xc   :  { %v1005_v52 = vmov 73   ;;  %v1006_v53 = vmov 79   ;;  %v1007_v56 = vmov 101   ;;  %v1008_v57 = vmov 77  }
   0xd   :  { %v1009_v58 = vmov 80   ;;  %v1010_v61 = vmov 40   ;;  %v1011_v62 = vmov 78   ;;  %v1012_v63 = vmov 18  }
   0xe   :  { %v1013_v3 = vmov 106   ;;  %v1014_v4 = vmov 82   ;;  %v1015_v5 = vmov 19  }
  0x75   :  { %v27_v19 = vpop.permute.xlu1 %26 }
  0x76   :  { %v16_v7 = vpop.xlane.xlu0 %15 }
  0x7e   :  { %v19_v9 = vpop.xlane.xlu0 %18 }
  0x7f   :  { %v20_v10 = vsub.f32 %v19_v9, %v16_v7  ;;  %v1017_v9 = vmov 83  }
  0x81   :  { %v23_v11 = vmul.f32 %v21_v8, %v20_v10  ;;  %v1016_v8 = vmov 45   ;;  %v1018_v10 = vmov 84  }
  0x83   :  { %v1126_v12 = vadd.f32 %v23_v11, %v16_v7 }
  0x85   :  { %107 = vperm.xlu1 %819, %v1126_v12   ;;  %47 = vperm.xlu0 %813, %v1126_v12   ;;  %v1138_v20 = vadd.f32 %v27_v19, %v1126_v12  ;;  %v1022_v19 = vmov 50  }
  0x86   :  { %37 = vperm.xlu2 %812, %v1126_v12  }
  0x8d   :  { %820 = vset.pattern.permute.xlu1 %v971_v13  ;;  %821 = vset.pattern.permute.xlu0 %v972_v14  ;;  %v1019_v14 = vmov 111  }
  0x8e   :  { %814 = vset.pattern.permute.xlu2 %v973_v15  ;;  %117 = vperm.xlu1 %820, %v1126_v12   ;;  %v1020_v15 = vmov 21  }
  0x8f   :  { %127 = vperm.xlu0 %821, %v1126_v12   ;;  %57 = vperm.xlu2 %814, %v1126_v12  }
  0x96   :  { %824 = vset.pattern.permute.xlu1 %v974_v16  ;;  %v1021_v16 = vmov 85  }
  0x97   :  { %826 = vset.pattern.permute.xlu0 %v975_v17  ;;  %815 = vset.pattern.permute.xlu2 %v976_v18 }
  0x98   :  { %157 = vperm.xlu1 %824, %v1126_v12   ;;  %177 = vperm.xlu0 %826, %v1126_v12  }
  0x99   :  { %67 = vperm.xlu2 %815, %v1126_v12  }
  0xa0   :  { %825 = vset.pattern.permute.xlu1 %v977_v21  ;;  %836 = vset.pattern.permute.xlu0 %v978_v22  ;;  %v1023_v21 = vmov 22   ;;  %v1024_v22 = vmov 23  }
  0xa1   :  { %816 = vset.pattern.permute.xlu2 %v979_v23  ;;  %167 = vperm.xlu1 %825, %v1126_v12  }
  0xa2   :  { %77 = vperm.xlu2 %816, %v1126_v12   ;;  %102 = vperm.xlu0 %836, %v1138_v20  }
  0xa9   :  { %829 = vset.pattern.permute.xlu1 %v980_v24 }
  0xaa   :  { %817 = vset.pattern.permute.xlu2 %v981_v25  ;;  %841 = vset.pattern.permute.xlu0 %v982_v26  ;;  %v1025_v26 = vmov 116  }
  0xab   :  { %87 = vperm.xlu2 %817, %v1126_v12   ;;  %152 = vperm.xlu0 %841, %v1138_v20  }
  0xac   :  { %32 = vperm.xlu1 %829, %v1138_v20  }
  0xb3   :  { %818 = vset.pattern.permute.xlu2 %v983_v27  ;;  %846 = vset.pattern.permute.xlu0 %v984_v28  ;;  %v1026_v27 = vmov 87   ;;  %v1027_v28 = vmov 24  }
  0xb4   :  { %831 = vset.pattern.permute.xlu1 %v985_v29  ;;  %97 = vperm.xlu2 %818, %v1126_v12  }
  0xb5   :  { %202 = vperm.xlu0 %846, %v1138_v20   ;;  %52 = vperm.xlu1 %831, %v1138_v20  }
  0xbc   :  { %822 = vset.pattern.permute.xlu2 %v986_v30 }
  0xbd   :  { %851 = vset.pattern.permute.xlu0 %v987_v31  ;;  %832 = vset.pattern.permute.xlu1 %v988_v32 }
  0xbe   :  { %137 = vperm.xlu2 %822, %v1126_v12   ;;  %227 = vperm.xlu0 %851, %v1126_v12  }
  0xbf   :  { %62 = vperm.xlu1 %832, %v1138_v20  }
  0xc6   :  { %823 = vset.pattern.permute.xlu2 %v989_v33  ;;  %856 = vset.pattern.permute.xlu0 %v990_v34  ;;  %v1028_v34 = vmov 55  }
  0xc7   :  { %833 = vset.pattern.permute.xlu1 %v991_v35  ;;  %147 = vperm.xlu2 %823, %v1126_v12  }
  0xc8   :  { %252 = vperm.xlu0 %856, %v1138_v20   ;;  %72 = vperm.xlu1 %833, %v1138_v20  }
  0xcf   :  { %827 = vset.pattern.permute.xlu2 %v992_v36  ;;  %v1029_v36 = vmov 88  }
  0xd0   :  { %861 = vset.pattern.permute.xlu0 %v993_v37  ;;  %834 = vset.pattern.permute.xlu1 %v994_v38  ;;  %v1030_v37 = vmov 89  }
  0xd1   :  { %187 = vperm.xlu2 %827, %v1126_v12   ;;  %277 = vperm.xlu0 %861, %v1126_v12  }
  0xd2   :  { %82 = vperm.xlu1 %834, %v1138_v20  }
  0xd9   :  { %828 = vset.pattern.permute.xlu2 %v995_v39  ;;  %866 = vset.pattern.permute.xlu0 %v996_v40 }
  0xda   :  { %835 = vset.pattern.permute.xlu1 %v997_v41  ;;  %197 = vperm.xlu2 %828, %v1126_v12  }
  0xdb   :  { %302 = vperm.xlu0 %866, %v1138_v20   ;;  %92 = vperm.xlu1 %835, %v1138_v20  }
  0xe0   :  { %v1161_v42 = vpop.permute.xlu2 %37 }
  0xe1   :  { %vm40_vm1 = vcmp.ge.f32.partialorder %v1114_v0, %v1161_v42 }
  0xe2   :  { %830 = vset.pattern.permute.xlu2 %v998_v43  ;;  %v1031_v43 = vmov 121  }
  0xe3   :  { %871 = vset.pattern.permute.xlu0 %v999_v44  ;;  %839 = vset.pattern.permute.xlu1 %v1000_v45  ;;  %v1032_v44 = vmov 26   ;;  %v1033_v45 = vmov 90  }
  0xe4   :  { %327 = vperm.xlu0 %871, %v1126_v12   ;;  %42 = vperm.xlu2 %830, %v1138_v20  }
  0xe5   :  { %132 = vperm.xlu1 %839, %v1138_v20  }
  0xe9   :  { %v1166_v46 = vpop.permute.xlu2 %57 }
  0xea   :  { %vm60_vm3 = vcmp.ge.f32.partialorder %v1114_v0, %v1166_v46 }
  0xec   :  { %876 = vset.pattern.permute.xlu0 %v1001_v47  ;;  %837 = vset.pattern.permute.xlu2 %v1002_v48 }
  0xed   :  { %840 = vset.pattern.permute.xlu1 %v1003_v49  ;;  %352 = vperm.xlu0 %876, %v1138_v20  }
  0xee   :  { %112 = vperm.xlu2 %837, %v1138_v20   ;;  %142 = vperm.xlu1 %840, %v1138_v20  }
  0xf3   :  { %v1171_v50 = vpop.permute.xlu2 %67 }
  0xf4   :  { %vm70_vm4 = vcmp.ge.f32.partialorder %v1114_v0, %v1171_v50 }
  0xf5   :  { %881 = vset.pattern.permute.xlu0 %v1004_v51 }
  0xf6   :  { %838 = vset.pattern.permute.xlu2 %v1005_v52  ;;  %844 = vset.pattern.permute.xlu1 %v1006_v53  ;;  %v1034_v53 = vmov 60  }
  0xf7   :  { %377 = vperm.xlu0 %881, %v1126_v12   ;;  %122 = vperm.xlu2 %838, %v1138_v20   ;;  %v1175_v54 = vpop.permute.xlu1 %107  ;;  %v48_v23 = vpop.permute.xlu0 %47 }
  0xf8   :  { %182 = vperm.xlu1 %844, %v1138_v20   ;;  %vm50_vm2 = vcmp.ge.f32.partialorder %v1114_v0, %v48_v23  ;;  %vm110_vm8 = vcmp.ge.f32.partialorder %v1114_v0, %v1175_v54 }
  0xfc   :  { %v1178_v55 = vpop.permute.xlu2 %77 }
  0xfd   :  { %vm80_vm5 = vcmp.ge.f32.partialorder %v1114_v0, %v1178_v55  ;;  %v1035_v55 = vmov 27  }
  0xff   :  { %886 = vset.pattern.permute.xlu0 %v1007_v56  ;;  %842 = vset.pattern.permute.xlu2 %v1008_v57  ;;  %v1036_v56 = vmov 28  }
 0x100   :  { %845 = vset.pattern.permute.xlu1 %v1009_v58  ;;  %402 = vperm.xlu0 %886, %v1138_v20   ;;  %v1181_v59 = vpop.permute.xlu1 %117 }
 0x101   :  { %162 = vperm.xlu2 %842, %v1138_v20   ;;  %192 = vperm.xlu1 %845, %v1138_v20   ;;  %v128_v29 = vpop.permute.xlu0 %127  ;;  %vm120_vm9 = vcmp.ge.f32.partialorder %v1114_v0, %v1181_v59  ;;  %v1037_v59 = vmov 126  }
 0x102   :  { %vm130_vm10 = vcmp.ge.f32.partialorder %v1114_v0, %v128_v29 }
 0x105   :  { %v1185_v60 = vpop.permute.xlu2 %87 }
 0x106   :  { %vm90_vm6 = vcmp.ge.f32.partialorder %v1114_v0, %v1185_v60  ;;  %v1038_v60 = vmov 92  }
 0x108   :  { %891 = vset.pattern.permute.xlu0 %v1010_v61  ;;  %v1039_v61 = vmov 29  }
 0x109   :  { %843 = vset.pattern.permute.xlu2 %v1011_v62  ;;  %847 = vset.pattern.permute.xlu1 %v1012_v63 }
 0x10a   :  { %427 = vperm.xlu0 %891, %v1126_v12   ;;  %172 = vperm.xlu2 %843, %v1138_v20   ;;  %v1189_v1 = vpop.permute.xlu1 %157  ;;  %v1230_v39 = vpop.permute.xlu0 %177 }
 0x10b   :  { %207 = vperm.xlu1 %847, %v1126_v12   ;;  %vm160_vm13 = vcmp.ge.f32.partialorder %v1114_v0, %v1189_v1  ;;  %vm180_vm15 = vcmp.ge.f32.partialorder %v1114_v0, %v1230_v39 }
 0x10e   :  { %v1192_v2 = vpop.permute.xlu2 %97 }
 0x10f   :  { %vm100_vm7 = vcmp.ge.f32.partialorder %v1114_v0, %v1192_v2 }
 0x112   :  { %896 = vset.pattern.permute.xlu0 %v1013_v3  ;;  %849 = vset.pattern.permute.xlu2 %v1014_v4 }
 0x113   :  { %848 = vset.pattern.permute.xlu1 %v1015_v5  ;;  %452 = vperm.xlu0 %896, %v1138_v20   ;;  %v1197_v6 = vpop.permute.xlu1 %167 }
 0x114   :  { %212 = vperm.xlu2 %849, %v1138_v20   ;;  %217 = vperm.xlu1 %848, %v1126_v12   ;;  %v103_v47 = vpop.permute.xlu0 %102  ;;  %vm170_vm14 = vcmp.ge.f32.partialorder %v1114_v0, %v1197_v6 }
 0x118   :  { %v1199_v7 = vpop.permute.xlu2 %137 }
 0x119   :  { %vm140_vm11 = vcmp.ge.f32.partialorder %v1114_v0, %v1199_v7 }
 0x11b   :  { %901 = vset.pattern.permute.xlu0 %v1016_v8  ;;  %v1040_v8 = vmov 93  }
 0x11c   :  { %850 = vset.pattern.permute.xlu2 %v1017_v9  ;;  %852 = vset.pattern.permute.xlu1 %v1018_v10  ;;  %v1041_v9 = vmov 94  }
 0x11d   :  { %477 = vperm.xlu0 %901, %v1126_v12   ;;  %222 = vperm.xlu2 %850, %v1138_v20   ;;  %v153_v63 = vpop.permute.xlu0 %152 }
 0x11e   :  { %232 = vperm.xlu1 %852, %v1138_v20   ;;  %v33_v11 = vpop.permute.xlu1 %32 }
 0x121   :  { %v1204_v13 = vpop.permute.xlu2 %147 }
 0x122   :  { %vm150_vm12 = vcmp.ge.f32.partialorder %v1114_v0, %v1204_v13  ;;  %v1042_v13 = vmov 31  }
 0x125   :  { %906 = vset.pattern.permute.xlu0 %v1019_v14  ;;  %853 = vset.pattern.permute.xlu2 %v1020_v15  ;;  %v1043_v14 = vmov 95  }
 0x126   :  { %854 = vset.pattern.permute.xlu1 %v1021_v16  ;;  %502 = vperm.xlu0 %906, %v1138_v20  }
 0x127   :  { %237 = vperm.xlu2 %853, %v1126_v12   ;;  %242 = vperm.xlu1 %854, %v1138_v20   ;;  %v53_v17 = vpop.permute.xlu1 %52  ;;  %v203_v15 = vpop.permute.xlu0 %202 }
 0x12b   :  { %v1209_v18 = vpop.permute.xlu2 %187 }
 0x12e   :  { %911 = vset.pattern.permute.xlu0 %v1022_v19 }
 0x12f   :  { %855 = vset.pattern.permute.xlu2 %v1023_v21  ;;  %857 = vset.pattern.permute.xlu1 %v1024_v22  ;;  %v1044_v21 = vmov 32   ;;  %v1045_v22 = vmov 33  }
 0x130   :  { %527 = vperm.xlu0 %911, %v1126_v12   ;;  %247 = vperm.xlu2 %855, %v1126_v12  }
 0x131   :  { %257 = vperm.xlu1 %857, %v1126_v12   ;;  %v63_v24 = vpop.permute.xlu1 %62 }
 0x134   :  { %v1214_v25 = vpop.permute.xlu2 %197 }
 0x138   :  { %916 = vset.pattern.permute.xlu0 %v1025_v26  ;;  %858 = vset.pattern.permute.xlu2 %v1026_v27  ;;  %v1046_v26 = vmov 97   ;;  %v1047_v27 = vmov 34  }
 0x139   :  { %859 = vset.pattern.permute.xlu1 %v1027_v28  ;;  %552 = vperm.xlu0 %916, %v1138_v20  }
 0x13a   :  { %262 = vperm.xlu2 %858, %v1138_v20   ;;  %267 = vperm.xlu1 %859, %v1126_v12   ;;  %v73_v30 = vpop.permute.xlu1 %72 }
 0x13e   :  { %v43_v31 = vpop.permute.xlu2 %42 }
 0x13f   :  { %v45_v32 = vsel %vm40_vm1, %v43_v31, %v33_v11  ;;  %vm190_vm1 = vcmp.ge.f32.partialorder %v1114_v0, %v1209_v18  ;;  %v1049_v31 = vmov 99  }
 0x140   :  { %v55_v33 = vsel %vm50_vm2, %v53_v17, %v45_v32  ;;  %vm200_vm2 = vcmp.ge.f32.partialorder %v1114_v0, %v1214_v25  ;;  %v228_v32 = vpop.permute.xlu0 %227 }
 0x141   :  { %921 = vset.pattern.permute.xlu0 %v1028_v34  ;;  %v65_v35 = vsel %vm60_vm3, %v63_v24, %v55_v33 }
 0x142   :  { %860 = vset.pattern.permute.xlu2 %v1029_v36  ;;  %862 = vset.pattern.permute.xlu1 %v1030_v37  ;;  %v75_v38 = vsel %vm70_vm4, %v73_v30, %v65_v35  ;;  %v1048_v30 = vmov 98   ;;  %v1050_v36 = vmov 36   ;;  %v1051_v37 = vmov 100  }
 0x143   :  { %577 = vperm.xlu0 %921, %v1126_v12   ;;  %272 = vperm.xlu2 %860, %v1138_v20  }
 0x144   :  { %282 = vperm.xlu1 %862, %v1138_v20   ;;  %v83_v40 = vpop.permute.xlu1 %82 }
 0x145   :  { %v85_v41 = vsel %vm80_vm5, %v83_v40, %v75_v38  ;;  %vm230_vm5 = vcmp.ge.f32.partialorder %v1114_v0, %v228_v32  ;;  %v1070_v32 = vmov 112  }
 0x148   :  { %v113_v42 = vpop.permute.xlu2 %112  ;;  %v253_v39 = vpop.permute.xlu0 %252 }
 0x14b   :  { %926 = vset.pattern.permute.xlu0 %v1031_v43  ;;  %863 = vset.pattern.permute.xlu2 %v1032_v44  ;;  %v1052_v43 = vmov 37   ;;  %v1053_v44 = vmov 38  }
 0x14c   :  { %864 = vset.pattern.permute.xlu1 %v1033_v45  ;;  %602 = vperm.xlu0 %926, %v1138_v20  }
 0x14d   :  { %287 = vperm.xlu2 %863, %v1126_v12   ;;  %292 = vperm.xlu1 %864, %v1138_v20   ;;  %v93_v46 = vpop.permute.xlu1 %92 }
 0x14e   :  { %v95_v48 = vsel %vm90_vm6, %v93_v46, %v85_v41 }
 0x14f   :  { %v105_v49 = vsel %vm100_vm7, %v103_v47, %v95_v48  ;;  %v1054_v47 = vmov 102   ;;  %v1055_v48 = vmov 39  }
 0x150   :  { %v115_v50 = vsel %vm110_vm8, %v113_v42, %v105_v49 }
 0x151   :  { %v123_v51 = vpop.permute.xlu2 %122 }
 0x152   :  { %v125_v52 = vsel %vm120_vm9, %v123_v51, %v115_v50 }
 0x154   :  { %931 = vset.pattern.permute.xlu0 %v1034_v53  ;;  %v1057_v53 = vmov 104  }
 0x155   :  { %865 = vset.pattern.permute.xlu2 %v1035_v55  ;;  %867 = vset.pattern.permute.xlu1 %v1036_v56  ;;  %v278_v56 = vpop.permute.xlu0 %277 }
 0x156   :  { %627 = vperm.xlu0 %931, %v1126_v12   ;;  %297 = vperm.xlu2 %865, %v1126_v12  }
 0x157   :  { %307 = vperm.xlu1 %867, %v1126_v12   ;;  %v133_v54 = vpop.permute.xlu1 %132 }
 0x158   :  { %v135_v57 = vsel %vm130_vm10, %v133_v54, %v125_v52  ;;  %v1056_v52 = vmov 103   ;;  %vm280_vm10 = vcmp.ge.f32.partialorder %v1114_v0, %v278_v56  ;;  %v1078_v56 = vmov 117  }
 0x15b   :  { %v163_v58 = vpop.permute.xlu2 %162 }
 0x15e   :  { %936 = vset.pattern.permute.xlu0 %v1037_v59  ;;  %868 = vset.pattern.permute.xlu2 %v1038_v60  ;;  %v1059_v59 = vmov 105  }
 0x15f   :  { %869 = vset.pattern.permute.xlu1 %v1039_v61  ;;  %652 = vperm.xlu0 %936, %v1138_v20  }
 0x160   :  { %312 = vperm.xlu2 %868, %v1138_v20   ;;  %317 = vperm.xlu1 %869, %v1126_v12   ;;  %v143_v62 = vpop.permute.xlu1 %142 }
 0x161   :  { %v145_v2 = vsel %vm140_vm11, %v143_v62, %v135_v57  ;;  %v303_v62 = vpop.permute.xlu0 %302 }
 0x162   :  { %v155_v3 = vsel %vm150_vm12, %v153_v63, %v145_v2 }
 0x163   :  { %v165_v4 = vsel %vm160_vm13, %v163_v58, %v155_v3  ;;  %v1058_v58 = vmov 41   ;;  %v1060_v3 = vmov 42  }
 0x164   :  { %v173_v5 = vpop.permute.xlu2 %172 }
 0x165   :  { %v175_v7 = vsel %vm170_vm14, %v173_v5, %v165_v4  ;;  %v1061_v4 = vmov 43  }
 0x168   :  { %870 = vset.pattern.permute.xlu2 %v1040_v8  ;;  %872 = vset.pattern.permute.xlu1 %v1041_v9  ;;  %v1062_v9 = vmov 107  }
 0x169   :  { %322 = vperm.xlu2 %870, %v1138_v20   ;;  %332 = vperm.xlu1 %872, %v1138_v20  }
 0x16a   :  { %v183_v10 = vpop.permute.xlu1 %182 }
 0x16b   :  { %v185_v1 = vsel %vm180_vm15, %v183_v10, %v175_v7  ;;  %v1063_v10 = vmov 44  }
 0x16e   :  { %v213_v11 = vpop.permute.xlu2 %212 }
 0x171   :  { %873 = vset.pattern.permute.xlu2 %v1042_v13  ;;  %874 = vset.pattern.permute.xlu1 %v1043_v14  ;;  %v1064_v14 = vmov 108  }
 0x172   :  { %337 = vperm.xlu2 %873, %v1126_v12   ;;  %342 = vperm.xlu1 %874, %v1138_v20  }
 0x173   :  { %v193_v6 = vpop.permute.xlu1 %192 }
 0x174   :  { %v195_v16 = vsel %vm190_vm1, %v193_v6, %v185_v1  ;;  %v1065_v6 = vmov 109  }
 0x175   :  { %v205_v17 = vsel %vm200_vm2, %v203_v15, %v195_v16  ;;  %v328_v16 = vpop.permute.xlu0 %327 }
 0x176   :  { %vm330_vm15 = vcmp.ge.f32.partialorder %v1114_v0, %v328_v16  ;;  %v1086_v16 = vmov 122  }
 0x177   :  { %v223_v19 = vpop.permute.xlu2 %222 }
 0x17a   :  { %875 = vset.pattern.permute.xlu2 %v1044_v21  ;;  %877 = vset.pattern.permute.xlu1 %v1045_v22  ;;  %v1066_v21 = vmov 46   ;;  %v1067_v22 = vmov 110  }
 0x17b   :  { %347 = vperm.xlu2 %875, %v1126_v12   ;;  %357 = vperm.xlu1 %877, %v1126_v12  }
 0x17d   :  { %v208_v23 = vpop.permute.xlu1 %207 }
 0x17e   :  { %vm210_vm3 = vcmp.ge.f32.partialorder %v1114_v0, %v208_v23 }
 0x17f   :  { %v215_v18 = vsel %vm210_vm3, %v213_v11, %v205_v17 }
 0x181   :  { %v238_v24 = vpop.permute.xlu2 %237 }
 0x182   :  { %vm240_vm6 = vcmp.ge.f32.partialorder %v1114_v0, %v238_v24  ;;  %v353_v24 = vpop.permute.xlu0 %352 }
 0x183   :  { %878 = vset.pattern.permute.xlu2 %v1046_v26  ;;  %879 = vset.pattern.permute.xlu1 %v1047_v27 }
 0x184   :  { %362 = vperm.xlu2 %878, %v1138_v20   ;;  %367 = vperm.xlu1 %879, %v1126_v12  }
 0x186   :  { %v218_v25 = vpop.permute.xlu1 %217 }
 0x187   :  { %vm220_vm4 = vcmp.ge.f32.partialorder %v1114_v0, %v218_v25  ;;  %v1068_v25 = vmov 47  }
 0x188   :  { %v225_v28 = vsel %vm220_vm4, %v223_v19, %v215_v18 }
 0x18a   :  { %v248_v29 = vpop.permute.xlu2 %247 }
 0x18b   :  { %vm250_vm7 = vcmp.ge.f32.partialorder %v1114_v0, %v248_v29 }
 0x18c   :  { %880 = vset.pattern.permute.xlu2 %v1048_v30  ;;  %882 = vset.pattern.permute.xlu1 %v1049_v31 }
 0x18d   :  { %372 = vperm.xlu2 %880, %v1138_v20   ;;  %382 = vperm.xlu1 %882, %v1138_v20  }
 0x190   :  { %v233_v33 = vpop.permute.xlu1 %232 }
 0x191   :  { %v235_v34 = vsel %vm230_vm5, %v233_v33, %v225_v28  ;;  %v1069_v28 = vmov 48   ;;  %v1071_v33 = vmov 49  }
 0x194   :  { %v263_v35 = vpop.permute.xlu2 %262 }
 0x195   :  { %883 = vset.pattern.permute.xlu2 %v1050_v36  ;;  %884 = vset.pattern.permute.xlu1 %v1051_v37  ;;  %v1072_v37 = vmov 113  }
 0x196   :  { %387 = vperm.xlu2 %883, %v1126_v12   ;;  %392 = vperm.xlu1 %884, %v1138_v20  }
 0x199   :  { %v243_v38 = vpop.permute.xlu1 %242 }
 0x19a   :  { %v245_v40 = vsel %vm240_vm6, %v243_v38, %v235_v34  ;;  %v1073_v38 = vmov 114  }
 0x19b   :  { %v255_v41 = vsel %vm250_vm7, %v253_v39, %v245_v40  ;;  %v378_v40 = vpop.permute.xlu0 %377 }
 0x19c   :  { %vm380_vm5 = vcmp.ge.f32.partialorder %v1114_v0, %v378_v40 }
 0x19d   :  { %v273_v42 = vpop.permute.xlu2 %272 }
 0x19e   :  { %885 = vset.pattern.permute.xlu2 %v1052_v43  ;;  %887 = vset.pattern.permute.xlu1 %v1053_v44  ;;  %v1074_v43 = vmov 51   ;;  %v1075_v44 = vmov 115  }
 0x19f   :  { %397 = vperm.xlu2 %885, %v1126_v12   ;;  %407 = vperm.xlu1 %887, %v1126_v12  }
 0x1a3   :  { %v258_v45 = vpop.permute.xlu1 %257 }
 0x1a4   :  { %vm260_vm8 = vcmp.ge.f32.partialorder %v1114_v0, %v258_v45 }
 0x1a5   :  { %v265_v46 = vsel %vm260_vm8, %v263_v35, %v255_v41 }
 0x1a7   :  { %888 = vset.pattern.permute.xlu2 %v1054_v47  ;;  %889 = vset.pattern.permute.xlu1 %v1055_v48  ;;  %v288_v49 = vpop.permute.xlu2 %287  ;;  %v403_v47 = vpop.permute.xlu0 %402 }
 0x1a8   :  { %412 = vperm.xlu2 %888, %v1138_v20   ;;  %417 = vperm.xlu1 %889, %v1126_v12   ;;  %vm290_vm11 = vcmp.ge.f32.partialorder %v1114_v0, %v288_v49 }
 0x1ac   :  { %v268_v50 = vpop.permute.xlu1 %267 }
 0x1ad   :  { %vm270_vm9 = vcmp.ge.f32.partialorder %v1114_v0, %v268_v50  ;;  %v1076_v50 = vmov 52  }
 0x1ae   :  { %v275_v51 = vsel %vm270_vm9, %v273_v42, %v265_v46 }
 0x1b0   :  { %890 = vset.pattern.permute.xlu2 %v1056_v52  ;;  %892 = vset.pattern.permute.xlu1 %v1057_v53  ;;  %v298_v55 = vpop.permute.xlu2 %297 }
 0x1b1   :  { %422 = vperm.xlu2 %890, %v1138_v20   ;;  %432 = vperm.xlu1 %892, %v1138_v20   ;;  %vm300_vm12 = vcmp.ge.f32.partialorder %v1114_v0, %v298_v55 }
 0x1b6   :  { %v283_v54 = vpop.permute.xlu1 %282 }
 0x1b7   :  { %v285_v57 = vsel %vm280_vm10, %v283_v54, %v275_v51  ;;  %v1077_v51 = vmov 53   ;;  %v1079_v54 = vmov 54  }
 0x1b9   :  { %893 = vset.pattern.permute.xlu2 %v1058_v58  ;;  %894 = vset.pattern.permute.xlu1 %v1059_v59  ;;  %v1329_v59 = vld [vmem:[%s1375_s0] sm:$0xff]  ;;  %s1095_s0 = smov [#allocation2]  }
 0x1ba   :  { %437 = vperm.xlu2 %893, %v1126_v12   ;;  %v313_v60 = vpop.permute.xlu2 %312  ;;  %442 = vperm.xlu1 %894, %v1138_v20   ;;  %s672_s17 = sshll.u32 %s1095_s0, 4  ;;  %s673_s17 = int_to_ptr.vmem [resolvable:$true] %s672_s17 }
 0x1bf   :  { %v293_v61 = vpop.permute.xlu1 %292 }
 0x1c0   :  { %v295_v63 = vsel %vm290_vm11, %v293_v61, %v285_v57  ;;  %v1081_v61 = vmov 119  }
 0x1c1   :  { %v305_v2 = vsel %vm300_vm12, %v303_v62, %v295_v63  ;;  %v428_v63 = vpop.permute.xlu0 %427 }
 0x1c2   :  { %895 = vset.pattern.permute.xlu2 %v1060_v3  ;;  %897 = vset.pattern.permute.xlu1 %v1061_v4  ;;  %vm430_vm10 = vcmp.ge.f32.partialorder %v1329_v59, %v428_v63  ;;  %v1082_v4 = vmov 56  }
 0x1c3   :  { %447 = vperm.xlu2 %895, %v1126_v12   ;;  %v323_v5 = vpop.permute.xlu2 %322  ;;  %457 = vperm.xlu1 %897, %v1126_v12  }
 0x1c9   :  { %v308_v7 = vpop.permute.xlu1 %307 }
 0x1ca   :  { %vm310_vm13 = vcmp.ge.f32.partialorder %v1114_v0, %v308_v7 }
 0x1cb   :  { %v315_v8 = vsel %vm310_vm13, %v313_v60, %v305_v2  ;;  %898 = vset.pattern.permute.xlu2 %v1062_v9  ;;  %899 = vset.pattern.permute.xlu1 %v1063_v10  ;;  %v453_v9 = vpop.permute.xlu0 %452 }
 0x1cc   :  { %462 = vperm.xlu2 %898, %v1138_v20   ;;  %v338_v1 = vpop.permute.xlu2 %337  ;;  %467 = vperm.xlu1 %899, %v1126_v12  }
 0x1cd   :  { %vm340_vm1 = vcmp.ge.f32.partialorder %v1114_v0, %v338_v1 }
 0x1d2   :  { %v318_v11 = vpop.permute.xlu1 %317 }
 0x1d3   :  { %vm320_vm14 = vcmp.ge.f32.partialorder %v1114_v0, %v318_v11  ;;  %v1084_v11 = vmov 57  }
 0x1d4   :  { %v325_v13 = vsel %vm320_vm14, %v323_v5, %v315_v8  ;;  %900 = vset.pattern.permute.xlu2 %v1064_v14  ;;  %902 = vset.pattern.permute.xlu1 %v1065_v6  ;;  %v1083_v5 = vmov 120  }
 0x1d5   :  { %472 = vperm.xlu2 %900, %v1138_v20   ;;  %v348_v15 = vpop.permute.xlu2 %347  ;;  %482 = vperm.xlu1 %902, %v1138_v20  }
 0x1d6   :  { %vm350_vm2 = vcmp.ge.f32.partialorder %v1114_v0, %v348_v15 }
 0x1db   :  { %v333_v17 = vpop.permute.xlu1 %332 }
 0x1dc   :  { %v335_v19 = vsel %vm330_vm15, %v333_v17, %v325_v13  ;;  %v1085_v13 = vmov 58   ;;  %v1087_v17 = vmov 59  }
 0x1dd   :  { %903 = vset.pattern.permute.xlu2 %v1066_v21  ;;  %904 = vset.pattern.permute.xlu1 %v1067_v22  ;;  %v1088_v21 = vmov 127  }
 0x1de   :  { %487 = vperm.xlu2 %903, %v1126_v12   ;;  %v363_v23 = vpop.permute.xlu2 %362  ;;  %492 = vperm.xlu1 %904, %v1138_v20  }
 0x1df   :  { %939 = vset.pattern.permute.xlu0 %v1088_v21 }
 0x1e4   :  { %v343_v18 = vpop.permute.xlu1 %342 }
 0x1e5   :  { %v345_v26 = vsel %vm340_vm1, %v343_v18, %v335_v19  ;;  %v1089_v18 = vmov 123  }
 0x1e6   :  { %v355_v27 = vsel %vm350_vm2, %v353_v24, %v345_v26  ;;  %905 = vset.pattern.permute.xlu2 %v1068_v25  ;;  %907 = vset.pattern.permute.xlu1 %v1069_v28  ;;  %v1090_v24 = vmov 124   ;;  %v478_v26 = vpop.permute.xlu0 %477 }
 0x1e7   :  { %497 = vperm.xlu2 %905, %v1126_v12   ;;  %v373_v29 = vpop.permute.xlu2 %372  ;;  %507 = vperm.xlu1 %907, %v1126_v12   ;;  %vm480_vm15 = vcmp.ge.f32.partialorder %v1329_v59, %v478_v26 }
 0x1ed   :  { %v358_v30 = vpop.permute.xlu1 %357 }
 0x1ee   :  { %vm360_vm3 = vcmp.ge.f32.partialorder %v1114_v0, %v358_v30  ;;  %v1092_v30 = vmov 125  }
 0x1ef   :  { %v365_v31 = vsel %vm360_vm3, %v363_v23, %v355_v27  ;;  %908 = vset.pattern.permute.xlu2 %v1070_v32  ;;  %909 = vset.pattern.permute.xlu1 %v1071_v33  ;;  %v503_v33 = vpop.permute.xlu0 %502 }
 0x1f0   :  { %512 = vperm.xlu2 %908, %v1138_v20   ;;  %v388_v34 = vpop.permute.xlu2 %387  ;;  %517 = vperm.xlu1 %909, %v1126_v12  }
 0x1f1   :  { %vm390_vm6 = vcmp.ge.f32.partialorder %v1114_v0, %v388_v34 }
 0x1f6   :  { %v368_v35 = vpop.permute.xlu1 %367 }
 0x1f7   :  { %vm370_vm4 = vcmp.ge.f32.partialorder %v1114_v0, %v368_v35 }
 0x1f8   :  { %v375_v36 = vsel %vm370_vm4, %v373_v29, %v365_v31  ;;  %910 = vset.pattern.permute.xlu2 %v1072_v37  ;;  %912 = vset.pattern.permute.xlu1 %v1073_v38  ;;  %v1091_v29 = vmov 61   ;;  %v1094_v37 = vmov 63  }
 0x1f9   :  { %522 = vperm.xlu2 %910, %v1138_v20   ;;  %v398_v39 = vpop.permute.xlu2 %397  ;;  %532 = vperm.xlu1 %912, %v1138_v20  }
 0x1fa   :  { %vm400_vm7 = vcmp.ge.f32.partialorder %v1114_v0, %v398_v39 }
 0x1ff   :  { %v383_v41 = vpop.permute.xlu1 %382 }
 0x200   :  { %v385_v42 = vsel %vm380_vm5, %v383_v41, %v375_v36  ;;  %v1093_v36 = vmov 62  }
 0x201   :  { %913 = vset.pattern.permute.xlu2 %v1074_v43  ;;  %914 = vset.pattern.permute.xlu1 %v1075_v44  ;;  %v528_v44 = vpop.permute.xlu0 %527 }
 0x202   :  { %537 = vperm.xlu2 %913, %v1126_v12   ;;  %v413_v45 = vpop.permute.xlu2 %412  ;;  %542 = vperm.xlu1 %914, %v1138_v20   ;;  %vm530_vm5 = vcmp.ge.f32.partialorder %v1329_v59, %v528_v44 }
 0x208   :  { %v393_v46 = vpop.permute.xlu1 %392 }
 0x209   :  { %v395_v48 = vsel %vm390_vm6, %v393_v46, %v385_v42 }
 0x20a   :  { %v405_v49 = vsel %vm400_vm7, %v403_v47, %v395_v48  ;;  %915 = vset.pattern.permute.xlu2 %v1076_v50  ;;  %917 = vset.pattern.permute.xlu1 %v1077_v51 }
 0x20b   :  { %547 = vperm.xlu2 %915, %v1126_v12   ;;  %v423_v52 = vpop.permute.xlu2 %422  ;;  %557 = vperm.xlu1 %917, %v1126_v12  }
 0x211   :  { %v408_v53 = vpop.permute.xlu1 %407 }
 0x212   :  { %vm410_vm8 = vcmp.ge.f32.partialorder %v1114_v0, %v408_v53  ;;  %v1080_v0 = vmov 118  }
 0x213   :  { %v415_v55 = vsel %vm410_vm8, %v413_v45, %v405_v49  ;;  %918 = vset.pattern.permute.xlu2 %v1078_v56  ;;  %919 = vset.pattern.permute.xlu1 %v1079_v54  ;;  %v553_v54 = vpop.permute.xlu0 %552 }
 0x214   :  { %562 = vperm.xlu2 %918, %v1138_v20   ;;  %v438_v57 = vpop.permute.xlu2 %437  ;;  %567 = vperm.xlu1 %919, %v1126_v12  }
 0x215   :  { %vm440_vm11 = vcmp.ge.f32.partialorder %v1329_v59, %v438_v57 }
 0x21a   :  { %v418_v58 = vpop.permute.xlu1 %417 }
 0x21b   :  { %vm420_vm9 = vcmp.ge.f32.partialorder %v1329_v59, %v418_v58 }
 0x21c   :  { %v425_v60 = vsel %vm420_vm9, %v423_v52, %v415_v55  ;;  %920 = vset.pattern.permute.xlu2 %v1080_v0  ;;  %922 = vset.pattern.permute.xlu1 %v1081_v61 }
 0x21d   :  { %572 = vperm.xlu2 %920, %v1138_v20   ;;  %v448_v62 = vpop.permute.xlu2 %447  ;;  %582 = vperm.xlu1 %922, %v1138_v20  }
 0x21e   :  { %vm450_vm12 = vcmp.ge.f32.partialorder %v1329_v59, %v448_v62 }
 0x223   :  { %v433_v2 = vpop.permute.xlu1 %432 }
 0x224   :  { %v435_v3 = vsel %vm430_vm10, %v433_v2, %v425_v60  ;;  %v578_v60 = vpop.permute.xlu0 %577 }
 0x225   :  { %923 = vset.pattern.permute.xlu2 %v1082_v4  ;;  %924 = vset.pattern.permute.xlu1 %v1083_v5  ;;  %vm580_vm10 = vcmp.ge.f32.partialorder %v1329_v59, %v578_v60 }
 0x226   :  { %587 = vperm.xlu2 %923, %v1126_v12   ;;  %v463_v7 = vpop.permute.xlu2 %462  ;;  %592 = vperm.xlu1 %924, %v1138_v20  }
 0x22c   :  { %v443_v8 = vpop.permute.xlu1 %442  ;;  %v603_v62 = vpop.permute.xlu0 %602 }
 0x22d   :  { %v445_v10 = vsel %vm440_vm11, %v443_v8, %v435_v3 }
 0x22e   :  { %v455_v1 = vsel %vm450_vm12, %v453_v9, %v445_v10  ;;  %925 = vset.pattern.permute.xlu2 %v1084_v11  ;;  %927 = vset.pattern.permute.xlu1 %v1085_v13 }
 0x22f   :  { %597 = vperm.xlu2 %925, %v1126_v12   ;;  %607 = vperm.xlu1 %927, %v1126_v12   ;;  %v473_v14 = vpop.permute.xlu2 %472 }
 0x235   :  { %v458_v6 = vpop.permute.xlu1 %457 }
 0x236   :  { %vm460_vm13 = vcmp.ge.f32.partialorder %v1329_v59, %v458_v6 }
 0x237   :  { %v465_v15 = vsel %vm460_vm13, %v463_v7, %v455_v1  ;;  %928 = vset.pattern.permute.xlu2 %v1086_v16  ;;  %929 = vset.pattern.permute.xlu1 %v1087_v17  ;;  %v628_v7 = vpop.permute.xlu0 %627 }
 0x238   :  { %612 = vperm.xlu2 %928, %v1138_v20   ;;  %617 = vperm.xlu1 %929, %v1126_v12   ;;  %v488_v19 = vpop.permute.xlu2 %487 }
 0x239   :  { %vm490_vm1 = vcmp.ge.f32.partialorder %v1329_v59, %v488_v19 }
 0x23e   :  { %v468_v22 = vpop.permute.xlu1 %467 }
 0x23f   :  { %vm470_vm14 = vcmp.ge.f32.partialorder %v1329_v59, %v468_v22  ;;  %v653_v16 = vpop.permute.xlu0 %652 }
 0x240   :  { %v475_v23 = vsel %vm470_vm14, %v473_v14, %v465_v15  ;;  %930 = vset.pattern.permute.xlu2 %v1089_v18  ;;  %932 = vset.pattern.permute.xlu1 %v1090_v24 }
 0x241   :  { %622 = vperm.xlu2 %930, %v1138_v20   ;;  %632 = vperm.xlu1 %932, %v1138_v20   ;;  %v498_v27 = vpop.permute.xlu2 %497 }
 0x242   :  { %vm500_vm2 = vcmp.ge.f32.partialorder %v1329_v59, %v498_v27 }
 0x247   :  { %v483_v25 = vpop.permute.xlu1 %482 }
 0x248   :  { %v485_v28 = vsel %vm480_vm15, %v483_v25, %v475_v23  ;;  %vm630_vm15 = vcmp.ge.f32.partialorder %v1329_v59, %v628_v7 }
 0x249   :  { %933 = vset.pattern.permute.xlu2 %v1091_v29  ;;  %934 = vset.pattern.permute.xlu1 %v1092_v30 }
 0x24a   :  { %637 = vperm.xlu2 %933, %v1126_v12   ;;  %642 = vperm.xlu1 %934, %v1138_v20   ;;  %v513_v31 = vpop.permute.xlu2 %512 }
 0x250   :  { %v493_v32 = vpop.permute.xlu1 %492 }
 0x251   :  { %v495_v34 = vsel %vm490_vm1, %v493_v32, %v485_v28 }
 0x252   :  { %v505_v35 = vsel %vm500_vm2, %v503_v33, %v495_v34  ;;  %935 = vset.pattern.permute.xlu2 %v1093_v36  ;;  %937 = vset.pattern.permute.xlu1 %v1094_v37 }
 0x253   :  { %647 = vperm.xlu2 %935, %v1126_v12   ;;  %657 = vperm.xlu1 %937, %v1126_v12   ;;  %v523_v38 = vpop.permute.xlu2 %522 }
 0x259   :  { %v508_v39 = vpop.permute.xlu1 %507 }
 0x25a   :  { %vm510_vm3 = vcmp.ge.f32.partialorder %v1329_v59, %v508_v39 }
 0x25b   :  { %v515_v40 = vsel %vm510_vm3, %v513_v31, %v505_v35  ;;  %938 = vset.pattern.permute.xlu2 %v1088_v21 }
 0x25c   :  { %662 = vperm.xlu2 %938, %v1138_v20   ;;  %v538_v41 = vpop.permute.xlu2 %537 }
 0x25d   :  { %vm540_vm6 = vcmp.ge.f32.partialorder %v1329_v59, %v538_v41 }
 0x262   :  { %v518_v42 = vpop.permute.xlu1 %517 }
 0x263   :  { %vm520_vm4 = vcmp.ge.f32.partialorder %v1329_v59, %v518_v42 }
 0x264   :  { %v525_v43 = vsel %vm520_vm4, %v523_v38, %v515_v40 }
 0x265   :  { %v548_v46 = vpop.permute.xlu2 %547 }
 0x266   :  { %vm550_vm8 = vcmp.ge.f32.partialorder %v1329_v59, %v548_v46 }
 0x26b   :  { %v533_v45 = vpop.permute.xlu1 %532 }
 0x26c   :  { %v535_v47 = vsel %vm530_vm5, %v533_v45, %v525_v43 }
 0x26e   :  { %v563_v49 = vpop.permute.xlu2 %562 }
 0x274   :  { %v543_v12 = vpop.permute.xlu1 %542 }
 0x275   :  { %v545_v48 = vsel %vm540_vm6, %v543_v12, %v535_v47 }
 0x276   :  { %v555_v3 = vsel %vm550_vm8, %v553_v54, %v545_v48 }
 0x277   :  { %v573_v51 = vpop.permute.xlu2 %572 }
 0x27d   :  { %v558_v50 = vpop.permute.xlu1 %557 }
 0x27e   :  { %vm560_vm7 = vcmp.ge.f32.partialorder %v1329_v59, %v558_v50 }
 0x27f   :  { %v565_v4 = vsel %vm560_vm7, %v563_v49, %v555_v3 }
 0x280   :  { %v588_v20 = vpop.permute.xlu2 %587 }
 0x281   :  { %vm590_vm11 = vcmp.ge.f32.partialorder %v1329_v59, %v588_v20 }
 0x286   :  { %v568_v52 = vpop.permute.xlu1 %567 }
 0x287   :  { %vm570_vm9 = vcmp.ge.f32.partialorder %v1329_v59, %v568_v52 }
 0x288   :  { %v575_v5 = vsel %vm570_vm9, %v573_v51, %v565_v4 }
 0x289   :  { %v598_v55 = vpop.permute.xlu2 %597 }
 0x28a   :  { %vm600_vm13 = vcmp.ge.f32.partialorder %v1329_v59, %v598_v55 }
 0x28f   :  { %v583_v53 = vpop.permute.xlu1 %582 }
 0x290   :  { %v585_v8 = vsel %vm580_vm10, %v583_v53, %v575_v5 }
 0x292   :  { %v613_v57 = vpop.permute.xlu2 %612 }
 0x298   :  { %v593_v56 = vpop.permute.xlu1 %592 }
 0x299   :  { %v595_v9 = vsel %vm590_vm11, %v593_v56, %v585_v8 }
 0x29a   :  { %v605_v11 = vsel %vm600_vm13, %v603_v62, %v595_v9 }
 0x29b   :  { %v623_v0 = vpop.permute.xlu2 %622 }
 0x2a1   :  { %v608_v58 = vpop.permute.xlu1 %607 }
 0x2a2   :  { %vm610_vm12 = vcmp.ge.f32.partialorder %v1329_v59, %v608_v58 }
 0x2a3   :  { %v615_v13 = vsel %vm610_vm12, %v613_v57, %v605_v11 }
 0x2a4   :  { %v638_v63 = vpop.permute.xlu2 %637 }
 0x2a5   :  { %vm640_vm1 = vcmp.ge.f32.partialorder %v1329_v59, %v638_v63 }
 0x2aa   :  { %v618_v61 = vpop.permute.xlu1 %617 }
 0x2ab   :  { %vm620_vm14 = vcmp.ge.f32.partialorder %v1329_v59, %v618_v61 }
 0x2ac   :  { %v625_v14 = vsel %vm620_vm14, %v623_v0, %v615_v13 }
 0x2ad   :  { %v648_v10 = vpop.permute.xlu2 %647 }
 0x2ae   :  { %vm650_vm2 = vcmp.ge.f32.partialorder %v1329_v59, %v648_v10 }
 0x2b3   :  { %v633_v2 = vpop.permute.xlu1 %632 }
 0x2b4   :  { %v635_v6 = vsel %vm630_vm15, %v633_v2, %v625_v14 }
 0x2b6   :  { %v663_v19 = vpop.permute.xlu2 %662 }
 0x2bc   :  { %v643_v1 = vpop.permute.xlu1 %642 }
 0x2bd   :  { %v645_v15 = vsel %vm640_vm1, %v643_v1, %v635_v6 }
 0x2be   :  { %v655_v21 = vsel %vm650_vm2, %v653_v16, %v645_v15 }
 0x2c5   :  { %v658_v17 = vpop.permute.xlu1 %657 }
 0x2c6   :  { %vm660_vm3 = vcmp.ge.f32.partialorder %v1329_v59, %v658_v17 }
 0x2c7   :  { %v665_v22 = vsel %vm660_vm3, %v663_v19, %v655_v21 }
 0x2c8   :  { %666 = vst.msk [vmem:[#allocation2] sm:$0xff] %vm13_vm0, %v665_v22 }
 0x2c9   :  { %677 = dma.vmem_to_hbm [thread:$0]  %s673_s17, 128, %s675_s20, [#allocation3]  }
 0x2ca   :  { %965 = dma.done.wait [#allocation3], 128  }
 0x2cb   :  { %966 = vsyncadd [#allocation3], 4294967168 }
 0x2cc   :  { %682 = vsyncpa [#allocation3], 1 }

</bundles_post_ra>
